<compile_context>
chip_gen: v5e
topology: v5e:2x2
jax: 0.10.0
libtpu: 0.0.40
codegen_flags: <defaults>
</compile_context>

<pallas_src>
import functools

import jax
import jax.numpy as jnp
from jax.experimental import pallas as pl
from jax.experimental.pallas import tpu as pltpu


# ---------------------------------------------------------------------------
# General path: per-tap K=C matmuls, f32 VMEM accumulator (C lane-sized)
# ---------------------------------------------------------------------------
def _basic_block_kernel_pertap(x_ref, w1_ref, s1_ref, b1_ref, w2_ref, s2_ref,
                               b2_ref, o_ref, xpad_ref, ypad_ref, acc_ref,
                               *, D, H, W, C):
    """conv+BN1+ReLU -> conv+BN2 (+residual) -> ReLU, all resident in VMEM.

    x_ref   : (1, D, H, W, C)   input sample (NDHWC block, input dtype)
    w*_ref  : (27, C, C)        conv taps, t = (kd*3+kh)*3+kw  (compute dtype)
    s*/b*   : (1, C)            folded BatchNorm scale / bias (f32)
    o_ref   : (1, D*H*W, C)     output sample, rows in (d, h, w) order
    xpad_ref, ypad_ref : VMEM (D+2, H+2, W+2, C) zero-halo slabs (compute dtype)
    acc_ref : VMEM (D*H*W, C) f32 accumulator (shared by both convs)
    """
    DHW = D * H * W

    # The halo shell never changes across samples; zero it once.  The batch
    # grid axis is "arbitrary" (sequential) so step 0 runs first on the core
    # that owns these scratch slabs.
    @pl.when(pl.program_id(0) == 0)
    def _():
        xpad_ref[...] = jnp.zeros_like(xpad_ref)
        ypad_ref[...] = jnp.zeros_like(ypad_ref)

    xpad_ref[1:D + 1, 1:H + 1, 1:W + 1, :] = x_ref[0].astype(xpad_ref.dtype)

    def conv(src_ref, w_ref):
        # 27 (DHW, C) @ (C, C) matmuls accumulated in f32 VMEM; no im2col slab
        # (27x less VMEM than gathering all taps side by side) and every tap
        # weight read lands at lane offset 0.
        for kd in range(3):
            for kh in range(3):
                for kw in range(3):
                    t = (kd * 3 + kh) * 3 + kw
                    win = src_ref[kd:kd + D, kh:kh + H, kw:kw + W, :]
                    part = jnp.dot(win.reshape(DHW, C), w_ref[t],
                                   preferred_element_type=jnp.float32)
                    if t == 0:
                        acc_ref[...] = part          # first tap: no zero-fill
                    else:
                        acc_ref[...] += part

    # ---- conv1 + BN1 + ReLU; intermediate stays in VMEM (halo-padded) ------
    conv(xpad_ref, w1_ref)
    h1 = jnp.maximum(acc_ref[...] * s1_ref[...] + b1_ref[...], 0.0)
    ypad_ref[1:D + 1, 1:H + 1, 1:W + 1, :] = (
        h1.reshape(D, H, W, C).astype(ypad_ref.dtype))

    # ---- conv2 + BN2 + residual (from resident input block) + ReLU ---------
    conv(ypad_ref, w2_ref)
    res = x_ref[0].reshape(DHW, C).astype(jnp.float32)
    out = jnp.maximum(acc_ref[...] * s2_ref[...] + b2_ref[...] + res, 0.0)
    o_ref[...] = out.reshape(1, DHW, C).astype(o_ref.dtype)


# ---------------------------------------------------------------------------
# Small-C path: W folded into the lane axis, block-banded W weights
# ---------------------------------------------------------------------------
def _basic_block_kernel_banded(x_ref, w1_ref, s1_ref, b1_ref, w2_ref, s2_ref,
                               b2_ref, o_ref, xpad_ref, ypad_ref, acc_ref,
                               *, D, H, WC):
    """Same fused BasicBlock, with (w, c) merged on the lane axis.

    x_ref   : (1, D, H, W*C)      input sample, (w, c) merged on lanes
    w*_ref  : (3, 3, W*C, W*C)    block-banded (over W) conv weights
    s*/b*   : (1, W*C)            folded BN scale / bias tiled over W (f32)
    o_ref   : (1, D*H, W*C)       lane-dense output slab
    xpad_ref, ypad_ref : VMEM (D+2, H+2, W*C)  slabs padded in D/H only
    acc_ref : VMEM (D*H, W*C) f32 accumulator
    """
    DH = D * H

    def zero_shell(ref):
        # Only the D/H halo needs zeroing (the W boundary is encoded in the
        # banded weights); these are thin, full-lane-width stores, re-done
        # every step so the batch axis stays "parallel" (megacore-safe).
        dt = ref.dtype
        zd = jnp.zeros((1, H + 2, WC), dt)
        ref[0:1, :, :] = zd
        ref[D + 1:D + 2, :, :] = zd
        zh = jnp.zeros((D + 2, 1, WC), dt)
        ref[:, 0:1, :] = zh
        ref[:, H + 1:H + 2, :] = zh

    zero_shell(xpad_ref)
    zero_shell(ypad_ref)
    xpad_ref[1:D + 1, 1:H + 1, :] = x_ref[0].astype(xpad_ref.dtype)

    def conv(src_ref, w_ref):
        # 9 lane-dense (D*H, W*C) @ (W*C, W*C) matmuls accumulated in f32; the
        # window reshape only merges leading dims (free, no lane relayout).
        for kd in range(3):
            for kh in range(3):
                win = src_ref[kd:kd + D, kh:kh + H, :]
                part = jnp.dot(win.reshape(DH, WC), w_ref[kd, kh],
                               preferred_element_type=jnp.float32)
                if kd == 0 and kh == 0:
                    acc_ref[...] = part
                else:
                    acc_ref[...] += part

    conv(xpad_ref, w1_ref)
    h1 = jnp.maximum(acc_ref[...] * s1_ref[...] + b1_ref[...], 0.0)
    ypad_ref[1:D + 1, 1:H + 1, :] = h1.reshape(D, H, WC).astype(ypad_ref.dtype)

    conv(ypad_ref, w2_ref)
    res = x_ref[0].reshape(DH, WC).astype(jnp.float32)
    out = jnp.maximum(acc_ref[...] * s2_ref[...] + b2_ref[...] + res, 0.0)
    o_ref[...] = out.reshape(1, DH, WC).astype(o_ref.dtype)


# ---------------------------------------------------------------------------
# Wrapper
# ---------------------------------------------------------------------------
def _vmem_limit_bytes():
    """~80% of per-core VMEM (headroom for compiler-internal scratch)."""
    cap = 64 * 1024 * 1024          # conservative fallback (v7x per-core VMEM)
    try:
        info = pltpu.get_tpu_info()
        cap = int(getattr(info, "vmem_capacity_bytes", cap) or cap)
    except Exception:
        pass
    return int(min(cap * 0.8, 100 * 1024 * 1024))


def _band_weights(w, W, dtype):
    """(3,3,3,Cin,Cout) -> (3,3,W*Cin,W*Cout) block-banded over the W axis.

    B[kd, kh, w_in*Cin + ci, w*Cout + co] = w[kd, kh, w_in - w + 1, ci, co]
    (zero where |w_in - w| > 1), so  out[.., w*Cout+co] = src_row @ B
    reproduces the kw taps including the zero 'SAME' padding at the W edges.
    """
    Cin, Cout = w.shape[3], w.shape[4]
    B = jnp.zeros((3, 3, W * Cin, W * Cout), dtype)
    for wpos in range(W):
        for kw in range(3):
            w_in = wpos + kw - 1
            if 0 <= w_in < W:
                B = B.at[:, :, w_in * Cin:(w_in + 1) * Cin,
                         wpos * Cout:(wpos + 1) * Cout].set(
                             w[:, :, kw].astype(dtype))
    return B


def basic_block_forward_ndhwc(x, params, compute_dtype=None):
    """Fused BasicBlock forward on a channels-last (NDHWC) activation.

    Use this entry point when stacking blocks to keep activations NDHWC
    end-to-end (no per-block NCDHW<->NDHWC HBM relayout).
    """
    N, D, H, W, C = x.shape
    w1, w2 = params["w1"], params["w2"]
    assert w1.shape == (3, 3, 3, C, C) and w2.shape == (3, 3, 3, C, C), (
        "BasicBlock with downsample=None / stride=1 requires inplanes==planes")

    # Small-C specialization: fold W onto the lane axis (lane-dense stores, no
    # per-tap lane-offset writes).  General path: 27 per-tap K=C matmuls.
    use_banded = (C % 128 != 0) and (W * C <= 512)
    if compute_dtype is None:
        # bf16 MXU operands (f32 accumulation) once C is lane-sized; keep the
        # tiny-C path in the input dtype (it is gather/store bound, not MXU).
        compute_dtype = x.dtype if use_banded else (
            jnp.bfloat16 if C % 128 == 0 else x.dtype)
    vmem_limit = _vmem_limit_bytes()

    f32 = jnp.float32
    s1 = params["scale1"].astype(f32)
    b1 = params["bias1"].astype(f32)
    s2 = params["scale2"].astype(f32)
    b2 = params["bias2"].astype(f32)

    if use_banded:
        WC = W * C
        DH = D * H
        kern = functools.partial(_basic_block_kernel_banded, D=D, H=H, WC=WC)
        out = pl.pallas_call(
            kern,
            out_shape=jax.ShapeDtypeStruct((N, DH, WC), x.dtype),
            grid=(N,),
            in_specs=[
                pl.BlockSpec((1, D, H, WC), lambda n: (n, 0, 0, 0)),
                pl.BlockSpec((3, 3, WC, WC), lambda n: (0, 0, 0, 0)),
                pl.BlockSpec((1, WC), lambda n: (0, 0)),
                pl.BlockSpec((1, WC), lambda n: (0, 0)),
                pl.BlockSpec((3, 3, WC, WC), lambda n: (0, 0, 0, 0)),
                pl.BlockSpec((1, WC), lambda n: (0, 0)),
                pl.BlockSpec((1, WC), lambda n: (0, 0)),
            ],
            out_specs=pl.BlockSpec((1, DH, WC), lambda n: (n, 0, 0)),
            scratch_shapes=[
                pltpu.VMEM((D + 2, H + 2, WC), compute_dtype),   # padded input
                pltpu.VMEM((D + 2, H + 2, WC), compute_dtype),   # padded conv1 out
                pltpu.VMEM((DH, WC), jnp.float32),               # f32 accumulator
            ],
            compiler_params=pltpu.CompilerParams(
                dimension_semantics=("parallel",),
                vmem_limit_bytes=vmem_limit),
        )(x.reshape(N, D, H, WC),
          _band_weights(w1, W, compute_dtype),
          jnp.tile(s1, W).reshape(1, WC), jnp.tile(b1, W).reshape(1, WC),
          _band_weights(w2, W, compute_dtype),
          jnp.tile(s2, W).reshape(1, WC), jnp.tile(b2, W).reshape(1, WC))
        return out.reshape(N, D, H, W, C)

    DHW = D * H * W
    kern = functools.partial(_basic_block_kernel_pertap, D=D, H=H, W=W, C=C)
    # TODO(synk): for very large D*H*W on v7x (64 MiB/TC VMEM), add a spatial
    # "parallel" grid axis over D with a 2-plane halo instead of one whole
    # sample per grid step.
    out = pl.pallas_call(
        kern,
        out_shape=jax.ShapeDtypeStruct((N, DHW, C), x.dtype),
        grid=(N,),
        in_specs=[
            pl.BlockSpec((1, D, H, W, C), lambda n: (n, 0, 0, 0, 0)),
            pl.BlockSpec((27, C, C), lambda n: (0, 0, 0)),
            pl.BlockSpec((1, C), lambda n: (0, 0)),
            pl.BlockSpec((1, C), lambda n: (0, 0)),
            pl.BlockSpec((27, C, C), lambda n: (0, 0, 0)),
            pl.BlockSpec((1, C), lambda n: (0, 0)),
            pl.BlockSpec((1, C), lambda n: (0, 0)),
        ],
        out_specs=pl.BlockSpec((1, DHW, C), lambda n: (n, 0, 0)),
        scratch_shapes=[
            pltpu.VMEM((D + 2, H + 2, W + 2, C), compute_dtype),  # padded input
            pltpu.VMEM((D + 2, H + 2, W + 2, C), compute_dtype),  # padded conv1 out
            pltpu.VMEM((DHW, C), jnp.float32),                    # f32 accumulator
        ],
        # "arbitrary": the zero halo is built once at step 0 and reused, so
        # the batch axis must run sequentially on a single core.
        compiler_params=pltpu.CompilerParams(
            dimension_semantics=("arbitrary",),
            vmem_limit_bytes=vmem_limit),
    )(x, w1.reshape(27, C, C).astype(compute_dtype),
      s1.reshape(1, C), b1.reshape(1, C),
      w2.reshape(27, C, C).astype(compute_dtype),
      s2.reshape(1, C), b2.reshape(1, C))
    return out.reshape(N, D, H, W, C)


@functools.partial(jax.jit, static_argnames=("compute_dtype",))
def basic_block_forward(x_ncdhw, params, compute_dtype=None):
    """BasicBlock forward with PyTorch NCDHW input/output layout."""
    x = jnp.transpose(x_ncdhw, (0, 2, 3, 4, 1))       # -> NDHWC (C on lanes)
    y = basic_block_forward_ndhwc(x, params, compute_dtype)
    return jnp.transpose(y, (0, 4, 1, 2, 3))          # -> NCDHW


# ---------------------------------------------------------------------------
# Pure-JAX reference (mirrors the kernel's mixed-precision casts)
# ---------------------------------------------------------------------------
def ref_forward(x_ncdhw, params, compute_dtype=jnp.float32):
    x = jnp.transpose(x_ncdhw, (0, 2, 3, 4, 1))

    def conv(v, w):
        return jax.lax.conv_general_dilated(
            v.astype(compute_dtype), w.astype(compute_dtype),
            window_strides=(1, 1, 1), padding="SAME",
            dimension_numbers=("NDHWC", "DHWIO", "NDHWC"),
            preferred_element_type=jnp.float32)

    out = jnp.maximum(conv(x, params["w1"]) * params["scale1"]
                      + params["bias1"], 0.0)
    out = conv(out, params["w2"]) * params["scale2"] + params["bias2"]
    out = jnp.maximum(out + x.astype(jnp.float32), 0.0).astype(x_ncdhw.dtype)
    return jnp.transpose(out, (0, 4, 1, 2, 3))


# ---------------------------------------------------------------------------
def make_params(key, inplanes, planes):
    k1, k2, k3, k4, k5, k6 = jax.random.split(key, 6)
    eps = 1e-5
    # conv weights stored as (kd, kh, kw, Cin, Cout)  (== PyTorch weight
    # [Cout, Cin, kd, kh, kw] transposed)
    w1 = 0.1 * jax.random.normal(k1, (3, 3, 3, inplanes, planes), jnp.float32)
    w2 = 0.1 * jax.random.normal(k2, (3, 3, 3, planes, planes), jnp.float32)
    # BatchNorm (inference mode): running_mean=0, running_var=1
    gamma1 = 1.0 + 0.1 * jax.random.normal(k3, (planes,), jnp.float32)
    beta1 = 0.1 * jax.random.normal(k4, (planes,), jnp.float32)
    gamma2 = 1.0 + 0.1 * jax.random.normal(k5, (planes,), jnp.float32)
    beta2 = 0.1 * jax.random.normal(k6, (planes,), jnp.float32)
    rm, rv = jnp.zeros((planes,)), jnp.ones((planes,))
    scale1 = gamma1 / jnp.sqrt(rv + eps)
    bias1 = beta1 - rm * scale1
    scale2 = gamma2 / jnp.sqrt(rv + eps)
    bias2 = beta2 - rm * scale2
    return dict(w1=w1, w2=w2, scale1=scale1, bias1=bias1,
                scale2=scale2, bias2=bias2)


if __name__ == "__main__":
    # TODO(synk): BatchNorm training-mode (batch statistics) is not
    # implemented; inference-mode BN is folded into per-channel scale/bias.
    key = jax.random.PRNGKey(0)
    kx1, kp1, kx2, kp2 = jax.random.split(key, 4)

    # --- test 1: the toy spec shape (small C -> banded lane-dense path, f32) -
    N, C, D, H, W = 2, 4, 8, 8, 8           # inplanes == planes == 4, stride=1
    x = jax.random.normal(kx1, (N, C, D, H, W), jnp.float32)
    params = make_params(kp1, C, C)
    out = jax.block_until_ready(basic_block_forward(x, params))
    ref = jax.block_until_ready(ref_forward(x, params))
    assert out.shape == (N, C, D, H, W)
    err = jnp.max(jnp.abs(out - ref))
    assert jnp.allclose(out, ref, rtol=1e-3, atol=1e-3), f"small-C max err {err}"

    # --- test 2: MXU-sized channels (C=128 -> per-tap bf16 path) -------------
    N2, C2, D2, H2, W2 = 1, 128, 4, 4, 4
    x2 = jax.random.normal(kx2, (N2, C2, D2, H2, W2), jnp.float32)
    params2 = make_params(kp2, C2, C2)
    out2 = jax.block_until_ready(basic_block_forward(x2, params2))
    ref2 = jax.block_until_ready(
        ref_forward(x2, params2, compute_dtype=jnp.bfloat16))
    err2 = jnp.max(jnp.abs(out2 - ref2))
    assert jnp.allclose(out2, ref2, rtol=2e-2, atol=5e-2), (
        f"large-C max err {err2}")

    print("KERNEL_OK")
</pallas_src>

<mosaic_0001>
module attributes {stable_mosaic.version = 11 : i64} {
  func.func @_basic_block_kernel_banded(%arg0: i32, %arg1: memref<1x8x8x32xf32, #tpu.memory_space<vmem>>, %arg2: memref<3x3x32x32xf32, #tpu.memory_space<vmem>>, %arg3: memref<1x32xf32, #tpu.memory_space<vmem>>, %arg4: memref<1x32xf32, #tpu.memory_space<vmem>>, %arg5: memref<3x3x32x32xf32, #tpu.memory_space<vmem>>, %arg6: memref<1x32xf32, #tpu.memory_space<vmem>>, %arg7: memref<1x32xf32, #tpu.memory_space<vmem>>, %arg8: memref<1x64x32xf32, #tpu.memory_space<vmem>>, %arg9: memref<10x10x32xf32, #tpu.memory_space<vmem>>, %arg10: memref<10x10x32xf32, #tpu.memory_space<vmem>>, %arg11: memref<64x32xf32, #tpu.memory_space<vmem>>) attributes {dimension_semantics = [#tpu.dimension_semantics<parallel>], iteration_bounds = array<i64: 2>, scalar_prefetch = 0 : i64, scratch_operands = 3 : i64, tpu.core_type = #tpu.core_type<tc>, window_params = [{transform_indices = @transform_0, window_bounds = array<i64: 1, 8, 8, 32>}, {pipeline_mode = #tpu.pipeline_mode<synchronous>, transform_indices = @transform_1, window_bounds = array<i64: 3, 3, 32, 32>}, {pipeline_mode = #tpu.pipeline_mode<synchronous>, transform_indices = @transform_2, window_bounds = array<i64: 1, 32>}, {pipeline_mode = #tpu.pipeline_mode<synchronous>, transform_indices = @transform_3, window_bounds = array<i64: 1, 32>}, {pipeline_mode = #tpu.pipeline_mode<synchronous>, transform_indices = @transform_4, window_bounds = array<i64: 3, 3, 32, 32>}, {pipeline_mode = #tpu.pipeline_mode<synchronous>, transform_indices = @transform_5, window_bounds = array<i64: 1, 32>}, {pipeline_mode = #tpu.pipeline_mode<synchronous>, transform_indices = @transform_6, window_bounds = array<i64: 1, 32>}, {transform_indices = @transform_7, window_bounds = array<i64: 1, 64, 32>}]} {
    %cst = arith.constant 0.000000e+00 : f32
    %0 = vector.broadcast %cst : f32 to vector<1x10x32xf32>
    %c0 = arith.constant 0 : index
    %c0_0 = arith.constant 0 : index
    %c0_1 = arith.constant 0 : index
    %1 = vector.load %arg9[%c0, %c0_0, %c0_1] : memref<10x10x32xf32, #tpu.memory_space<vmem>>, vector<1x10x32xf32>
    tpu.vector_store %arg9[%c0, %c0_0, %c0_1], %0 {strides = array<i32>} : memref<10x10x32xf32, #tpu.memory_space<vmem>>, vector<1x10x32xf32>,
    %c9 = arith.constant 9 : index
    %c0_2 = arith.constant 0 : index
    %c0_3 = arith.constant 0 : index
    %2 = vector.load %arg9[%c9, %c0_2, %c0_3] : memref<10x10x32xf32, #tpu.memory_space<vmem>>, vector<1x10x32xf32>
    tpu.vector_store %arg9[%c9, %c0_2, %c0_3], %0 {strides = array<i32>} : memref<10x10x32xf32, #tpu.memory_space<vmem>>, vector<1x10x32xf32>,
    %cst_4 = arith.constant 0.000000e+00 : f32
    %3 = vector.broadcast %cst_4 : f32 to vector<10x1x32xf32>
    %c0_5 = arith.constant 0 : index
    %c0_6 = arith.constant 0 : index
    %c0_7 = arith.constant 0 : index
    %4 = vector.load %arg9[%c0_5, %c0_6, %c0_7] : memref<10x10x32xf32, #tpu.memory_space<vmem>>, vector<10x1x32xf32>
    tpu.vector_store %arg9[%c0_5, %c0_6, %c0_7], %3 {strides = array<i32>} : memref<10x10x32xf32, #tpu.memory_space<vmem>>, vector<10x1x32xf32>,
    %c0_8 = arith.constant 0 : index
    %c9_9 = arith.constant 9 : index
    %c0_10 = arith.constant 0 : index
    %5 = vector.load %arg9[%c0_8, %c9_9, %c0_10] : memref<10x10x32xf32, #tpu.memory_space<vmem>>, vector<10x1x32xf32>
    tpu.vector_store %arg9[%c0_8, %c9_9, %c0_10], %3 {strides = array<i32>} : memref<10x10x32xf32, #tpu.memory_space<vmem>>, vector<10x1x32xf32>,
    %cst_11 = arith.constant 0.000000e+00 : f32
    %6 = vector.broadcast %cst_11 : f32 to vector<1x10x32xf32>
    %c0_12 = arith.constant 0 : index
    %c0_13 = arith.constant 0 : index
    %c0_14 = arith.constant 0 : index
    %7 = vector.load %arg10[%c0_12, %c0_13, %c0_14] : memref<10x10x32xf32, #tpu.memory_space<vmem>>, vector<1x10x32xf32>
    tpu.vector_store %arg10[%c0_12, %c0_13, %c0_14], %6 {strides = array<i32>} : memref<10x10x32xf32, #tpu.memory_space<vmem>>, vector<1x10x32xf32>,
    %c9_15 = arith.constant 9 : index
    %c0_16 = arith.constant 0 : index
    %c0_17 = arith.constant 0 : index
    %8 = vector.load %arg10[%c9_15, %c0_16, %c0_17] : memref<10x10x32xf32, #tpu.memory_space<vmem>>, vector<1x10x32xf32>
    tpu.vector_store %arg10[%c9_15, %c0_16, %c0_17], %6 {strides = array<i32>} : memref<10x10x32xf32, #tpu.memory_space<vmem>>, vector<1x10x32xf32>,
    %cst_18 = arith.constant 0.000000e+00 : f32
    %9 = vector.broadcast %cst_18 : f32 to vector<10x1x32xf32>
    %c0_19 = arith.constant 0 : index
    %c0_20 = arith.constant 0 : index
    %c0_21 = arith.constant 0 : index
    %10 = vector.load %arg10[%c0_19, %c0_20, %c0_21] : memref<10x10x32xf32, #tpu.memory_space<vmem>>, vector<10x1x32xf32>
    tpu.vector_store %arg10[%c0_19, %c0_20, %c0_21], %9 {strides = array<i32>} : memref<10x10x32xf32, #tpu.memory_space<vmem>>, vector<10x1x32xf32>,
    %c0_22 = arith.constant 0 : index
    %c9_23 = arith.constant 9 : index
    %c0_24 = arith.constant 0 : index
    %11 = vector.load %arg10[%c0_22, %c9_23, %c0_24] : memref<10x10x32xf32, #tpu.memory_space<vmem>>, vector<10x1x32xf32>
    tpu.vector_store %arg10[%c0_22, %c9_23, %c0_24], %9 {strides = array<i32>} : memref<10x10x32xf32, #tpu.memory_space<vmem>>, vector<10x1x32xf32>,
    %c0_25 = arith.constant 0 : index
    %c0_26 = arith.constant 0 : index
    %c0_27 = arith.constant 0 : index
    %c0_28 = arith.constant 0 : index
    %12 = vector.load %arg1[%c0_25, %c0_26, %c0_27, %c0_28] : memref<1x8x8x32xf32, #tpu.memory_space<vmem>>, vector<1x8x8x32xf32>
    %13 = vector.shape_cast %12 : vector<1x8x8x32xf32> to vector<8x8x32xf32>
    %c1 = arith.constant 1 : index
    %c1_29 = arith.constant 1 : index
    %c0_30 = arith.constant 0 : index
    %14 = vector.load %arg9[%c1, %c1_29, %c0_30] : memref<10x10x32xf32, #tpu.memory_space<vmem>>, vector<8x8x32xf32>
    tpu.vector_store %arg9[%c1, %c1_29, %c0_30], %13 {strides = array<i32>} : memref<10x10x32xf32, #tpu.memory_space<vmem>>, vector<8x8x32xf32>,
    %c0_31 = arith.constant 0 : index
    %c0_32 = arith.constant 0 : index
    %c0_33 = arith.constant 0 : index
    %15 = vector.load %arg9[%c0_31, %c0_32, %c0_33] : memref<10x10x32xf32, #tpu.memory_space<vmem>>, vector<8x8x32xf32>
    %16 = vector.shape_cast %15 : vector<8x8x32xf32> to vector<64x32xf32>
    %c0_34 = arith.constant 0 : index
    %c0_35 = arith.constant 0 : index
    %c0_36 = arith.constant 0 : index
    %c0_37 = arith.constant 0 : index
    %17 = vector.load %arg2[%c0_34, %c0_35, %c0_36, %c0_37] : memref<3x3x32x32xf32, #tpu.memory_space<vmem>>, vector<1x1x32x32xf32>
    %18 = vector.shape_cast %17 : vector<1x1x32x32xf32> to vector<32x32xf32>
    %cst_38 = arith.constant dense<0.000000e+00> : vector<64x32xf32>
    %19 = tpu.matmul %16, %18, %cst_38 {dimension_numbers = #tpu.dot_dimension_numbers<[1], [0], [0], [1], [0, 0, 1, 1], [], []>} : vector<64x32xf32>, vector<32x32xf32>, vector<64x32xf32> -> vector<64x32xf32>
    %c0_39 = arith.constant 0 : index
    %c0_40 = arith.constant 0 : index
    %20 = vector.load %arg11[%c0_39, %c0_40] : memref<64x32xf32, #tpu.memory_space<vmem>>, vector<64x32xf32>
    tpu.vector_store %arg11[%c0_39, %c0_40], %19 {strides = array<i32>} : memref<64x32xf32, #tpu.memory_space<vmem>>, vector<64x32xf32>,
    %c0_41 = arith.constant 0 : index
    %c1_42 = arith.constant 1 : index
    %c0_43 = arith.constant 0 : index
    %21 = vector.load %arg9[%c0_41, %c1_42, %c0_43] : memref<10x10x32xf32, #tpu.memory_space<vmem>>, vector<8x8x32xf32>
    %22 = vector.shape_cast %21 : vector<8x8x32xf32> to vector<64x32xf32>
    %c0_44 = arith.constant 0 : index
    %c1_45 = arith.constant 1 : index
    %c0_46 = arith.constant 0 : index
    %c0_47 = arith.constant 0 : index
    %23 = vector.load %arg2[%c0_44, %c1_45, %c0_46, %c0_47] : memref<3x3x32x32xf32, #tpu.memory_space<vmem>>, vector<1x1x32x32xf32>
    %24 = vector.shape_cast %23 : vector<1x1x32x32xf32> to vector<32x32xf32>
    %cst_48 = arith.constant dense<0.000000e+00> : vector<64x32xf32>
    %25 = tpu.matmul %22, %24, %cst_48 {dimension_numbers = #tpu.dot_dimension_numbers<[1], [0], [0], [1], [0, 0, 1, 1], [], []>} : vector<64x32xf32>, vector<32x32xf32>, vector<64x32xf32> -> vector<64x32xf32>
    %c0_49 = arith.constant 0 : index
    %c0_50 = arith.constant 0 : index
    %26 = vector.load %arg11[%c0_49, %c0_50] : memref<64x32xf32, #tpu.memory_space<vmem>>, vector<64x32xf32>
    %27 = arith.addf %26, %25 : vector<64x32xf32>
    %c0_51 = arith.constant 0 : index
    %c0_52 = arith.constant 0 : index
    %28 = vector.load %arg11[%c0_51, %c0_52] : memref<64x32xf32, #tpu.memory_space<vmem>>, vector<64x32xf32>
    tpu.vector_store %arg11[%c0_51, %c0_52], %27 {strides = array<i32>} : memref<64x32xf32, #tpu.memory_space<vmem>>, vector<64x32xf32>,
    %c0_53 = arith.constant 0 : index
    %c2 = arith.constant 2 : index
    %c0_54 = arith.constant 0 : index
    %29 = vector.load %arg9[%c0_53, %c2, %c0_54] : memref<10x10x32xf32, #tpu.memory_space<vmem>>, vector<8x8x32xf32>
    %30 = vector.shape_cast %29 : vector<8x8x32xf32> to vector<64x32xf32>
    %c0_55 = arith.constant 0 : index
    %c2_56 = arith.constant 2 : index
    %c0_57 = arith.constant 0 : index
    %c0_58 = arith.constant 0 : index
    %31 = vector.load %arg2[%c0_55, %c2_56, %c0_57, %c0_58] : memref<3x3x32x32xf32, #tpu.memory_space<vmem>>, vector<1x1x32x32xf32>
    %32 = vector.shape_cast %31 : vector<1x1x32x32xf32> to vector<32x32xf32>
    %cst_59 = arith.constant dense<0.000000e+00> : vector<64x32xf32>
    %33 = tpu.matmul %30, %32, %cst_59 {dimension_numbers = #tpu.dot_dimension_numbers<[1], [0], [0], [1], [0, 0, 1, 1], [], []>} : vector<64x32xf32>, vector<32x32xf32>, vector<64x32xf32> -> vector<64x32xf32>
    %c0_60 = arith.constant 0 : index
    %c0_61 = arith.constant 0 : index
    %34 = vector.load %arg11[%c0_60, %c0_61] : memref<64x32xf32, #tpu.memory_space<vmem>>, vector<64x32xf32>
    %35 = arith.addf %34, %33 : vector<64x32xf32>
    %c0_62 = arith.constant 0 : index
    %c0_63 = arith.constant 0 : index
    %36 = vector.load %arg11[%c0_62, %c0_63] : memref<64x32xf32, #tpu.memory_space<vmem>>, vector<64x32xf32>
    tpu.vector_store %arg11[%c0_62, %c0_63], %35 {strides = array<i32>} : memref<64x32xf32, #tpu.memory_space<vmem>>, vector<64x32xf32>,
    %c1_64 = arith.constant 1 : index
    %c0_65 = arith.constant 0 : index
    %c0_66 = arith.constant 0 : index
    %37 = vector.load %arg9[%c1_64, %c0_65, %c0_66] : memref<10x10x32xf32, #tpu.memory_space<vmem>>, vector<8x8x32xf32>
    %38 = vector.shape_cast %37 : vector<8x8x32xf32> to vector<64x32xf32>
    %c1_67 = arith.constant 1 : index
    %c0_68 = arith.constant 0 : index
    %c0_69 = arith.constant 0 : index
    %c0_70 = arith.constant 0 : index
    %39 = vector.load %arg2[%c1_67, %c0_68, %c0_69, %c0_70] : memref<3x3x32x32xf32, #tpu.memory_space<vmem>>, vector<1x1x32x32xf32>
    %40 = vector.shape_cast %39 : vector<1x1x32x32xf32> to vector<32x32xf32>
    %cst_71 = arith.constant dense<0.000000e+00> : vector<64x32xf32>
    %41 = tpu.matmul %38, %40, %cst_71 {dimension_numbers = #tpu.dot_dimension_numbers<[1], [0], [0], [1], [0, 0, 1, 1], [], []>} : vector<64x32xf32>, vector<32x32xf32>, vector<64x32xf32> -> vector<64x32xf32>
    %c0_72 = arith.constant 0 : index
    %c0_73 = arith.constant 0 : index
    %42 = vector.load %arg11[%c0_72, %c0_73] : memref<64x32xf32, #tpu.memory_space<vmem>>, vector<64x32xf32>
    %43 = arith.addf %42, %41 : vector<64x32xf32>
    %c0_74 = arith.constant 0 : index
    %c0_75 = arith.constant 0 : index
    %44 = vector.load %arg11[%c0_74, %c0_75] : memref<64x32xf32, #tpu.memory_space<vmem>>, vector<64x32xf32>
    tpu.vector_store %arg11[%c0_74, %c0_75], %43 {strides = array<i32>} : memref<64x32xf32, #tpu.memory_space<vmem>>, vector<64x32xf32>,
    %c1_76 = arith.constant 1 : index
    %c1_77 = arith.constant 1 : index
    %c0_78 = arith.constant 0 : index
    %45 = vector.load %arg9[%c1_76, %c1_77, %c0_78] : memref<10x10x32xf32, #tpu.memory_space<vmem>>, vector<8x8x32xf32>
    %46 = vector.shape_cast %45 : vector<8x8x32xf32> to vector<64x32xf32>
    %c1_79 = arith.constant 1 : index
    %c1_80 = arith.constant 1 : index
    %c0_81 = arith.constant 0 : index
    %c0_82 = arith.constant 0 : index
    %47 = vector.load %arg2[%c1_79, %c1_80, %c0_81, %c0_82] : memref<3x3x32x32xf32, #tpu.memory_space<vmem>>, vector<1x1x32x32xf32>
    %48 = vector.shape_cast %47 : vector<1x1x32x32xf32> to vector<32x32xf32>
    %cst_83 = arith.constant dense<0.000000e+00> : vector<64x32xf32>
    %49 = tpu.matmul %46, %48, %cst_83 {dimension_numbers = #tpu.dot_dimension_numbers<[1], [0], [0], [1], [0, 0, 1, 1], [], []>} : vector<64x32xf32>, vector<32x32xf32>, vector<64x32xf32> -> vector<64x32xf32>
    %c0_84 = arith.constant 0 : index
    %c0_85 = arith.constant 0 : index
    %50 = vector.load %arg11[%c0_84, %c0_85] : memref<64x32xf32, #tpu.memory_space<vmem>>, vector<64x32xf32>
    %51 = arith.addf %50, %49 : vector<64x32xf32>
    %c0_86 = arith.constant 0 : index
    %c0_87 = arith.constant 0 : index
    %52 = vector.load %arg11[%c0_86, %c0_87] : memref<64x32xf32, #tpu.memory_space<vmem>>, vector<64x32xf32>
    tpu.vector_store %arg11[%c0_86, %c0_87], %51 {strides = array<i32>} : memref<64x32xf32, #tpu.memory_space<vmem>>, vector<64x32xf32>,
    %c1_88 = arith.constant 1 : index
    %c2_89 = arith.constant 2 : index
    %c0_90 = arith.constant 0 : index
    %53 = vector.load %arg9[%c1_88, %c2_89, %c0_90] : memref<10x10x32xf32, #tpu.memory_space<vmem>>, vector<8x8x32xf32>
    %54 = vector.shape_cast %53 : vector<8x8x32xf32> to vector<64x32xf32>
    %c1_91 = arith.constant 1 : index
    %c2_92 = arith.constant 2 : index
    %c0_93 = arith.constant 0 : index
    %c0_94 = arith.constant 0 : index
    %55 = vector.load %arg2[%c1_91, %c2_92, %c0_93, %c0_94] : memref<3x3x32x32xf32, #tpu.memory_space<vmem>>, vector<1x1x32x32xf32>
    %56 = vector.shape_cast %55 : vector<1x1x32x32xf32> to vector<32x32xf32>
    %cst_95 = arith.constant dense<0.000000e+00> : vector<64x32xf32>
    %57 = tpu.matmul %54, %56, %cst_95 {dimension_numbers = #tpu.dot_dimension_numbers<[1], [0], [0], [1], [0, 0, 1, 1], [], []>} : vector<64x32xf32>, vector<32x32xf32>, vector<64x32xf32> -> vector<64x32xf32>
    %c0_96 = arith.constant 0 : index
    %c0_97 = arith.constant 0 : index
    %58 = vector.load %arg11[%c0_96, %c0_97] : memref<64x32xf32, #tpu.memory_space<vmem>>, vector<64x32xf32>
    %59 = arith.addf %58, %57 : vector<64x32xf32>
    %c0_98 = arith.constant 0 : index
    %c0_99 = arith.constant 0 : index
    %60 = vector.load %arg11[%c0_98, %c0_99] : memref<64x32xf32, #tpu.memory_space<vmem>>, vector<64x32xf32>
    tpu.vector_store %arg11[%c0_98, %c0_99], %59 {strides = array<i32>} : memref<64x32xf32, #tpu.memory_space<vmem>>, vector<64x32xf32>,
    %c2_100 = arith.constant 2 : index
    %c0_101 = arith.constant 0 : index
    %c0_102 = arith.constant 0 : index
    %61 = vector.load %arg9[%c2_100, %c0_101, %c0_102] : memref<10x10x32xf32, #tpu.memory_space<vmem>>, vector<8x8x32xf32>
    %62 = vector.shape_cast %61 : vector<8x8x32xf32> to vector<64x32xf32>
    %c2_103 = arith.constant 2 : index
    %c0_104 = arith.constant 0 : index
    %c0_105 = arith.constant 0 : index
    %c0_106 = arith.constant 0 : index
    %63 = vector.load %arg2[%c2_103, %c0_104, %c0_105, %c0_106] : memref<3x3x32x32xf32, #tpu.memory_space<vmem>>, vector<1x1x32x32xf32>
    %64 = vector.shape_cast %63 : vector<1x1x32x32xf32> to vector<32x32xf32>
    %cst_107 = arith.constant dense<0.000000e+00> : vector<64x32xf32>
    %65 = tpu.matmul %62, %64, %cst_107 {dimension_numbers = #tpu.dot_dimension_numbers<[1], [0], [0], [1], [0, 0, 1, 1], [], []>} : vector<64x32xf32>, vector<32x32xf32>, vector<64x32xf32> -> vector<64x32xf32>
    %c0_108 = arith.constant 0 : index
    %c0_109 = arith.constant 0 : index
    %66 = vector.load %arg11[%c0_108, %c0_109] : memref<64x32xf32, #tpu.memory_space<vmem>>, vector<64x32xf32>
    %67 = arith.addf %66, %65 : vector<64x32xf32>
    %c0_110 = arith.constant 0 : index
    %c0_111 = arith.constant 0 : index
    %68 = vector.load %arg11[%c0_110, %c0_111] : memref<64x32xf32, #tpu.memory_space<vmem>>, vector<64x32xf32>
    tpu.vector_store %arg11[%c0_110, %c0_111], %67 {strides = array<i32>} : memref<64x32xf32, #tpu.memory_space<vmem>>, vector<64x32xf32>,
    %c2_112 = arith.constant 2 : index
    %c1_113 = arith.constant 1 : index
    %c0_114 = arith.constant 0 : index
    %69 = vector.load %arg9[%c2_112, %c1_113, %c0_114] : memref<10x10x32xf32, #tpu.memory_space<vmem>>, vector<8x8x32xf32>
    %70 = vector.shape_cast %69 : vector<8x8x32xf32> to vector<64x32xf32>
    %c2_115 = arith.constant 2 : index
    %c1_116 = arith.constant 1 : index
    %c0_117 = arith.constant 0 : index
    %c0_118 = arith.constant 0 : index
    %71 = vector.load %arg2[%c2_115, %c1_116, %c0_117, %c0_118] : memref<3x3x32x32xf32, #tpu.memory_space<vmem>>, vector<1x1x32x32xf32>
    %72 = vector.shape_cast %71 : vector<1x1x32x32xf32> to vector<32x32xf32>
    %cst_119 = arith.constant dense<0.000000e+00> : vector<64x32xf32>
    %73 = tpu.matmul %70, %72, %cst_119 {dimension_numbers = #tpu.dot_dimension_numbers<[1], [0], [0], [1], [0, 0, 1, 1], [], []>} : vector<64x32xf32>, vector<32x32xf32>, vector<64x32xf32> -> vector<64x32xf32>
    %c0_120 = arith.constant 0 : index
    %c0_121 = arith.constant 0 : index
    %74 = vector.load %arg11[%c0_120, %c0_121] : memref<64x32xf32, #tpu.memory_space<vmem>>, vector<64x32xf32>
    %75 = arith.addf %74, %73 : vector<64x32xf32>
    %c0_122 = arith.constant 0 : index
    %c0_123 = arith.constant 0 : index
    %76 = vector.load %arg11[%c0_122, %c0_123] : memref<64x32xf32, #tpu.memory_space<vmem>>, vector<64x32xf32>
    tpu.vector_store %arg11[%c0_122, %c0_123], %75 {strides = array<i32>} : memref<64x32xf32, #tpu.memory_space<vmem>>, vector<64x32xf32>,
    %c2_124 = arith.constant 2 : index
    %c2_125 = arith.constant 2 : index
    %c0_126 = arith.constant 0 : index
    %77 = vector.load %arg9[%c2_124, %c2_125, %c0_126] : memref<10x10x32xf32, #tpu.memory_space<vmem>>, vector<8x8x32xf32>
    %78 = vector.shape_cast %77 : vector<8x8x32xf32> to vector<64x32xf32>
    %c2_127 = arith.constant 2 : index
    %c2_128 = arith.constant 2 : index
    %c0_129 = arith.constant 0 : index
    %c0_130 = arith.constant 0 : index
    %79 = vector.load %arg2[%c2_127, %c2_128, %c0_129, %c0_130] : memref<3x3x32x32xf32, #tpu.memory_space<vmem>>, vector<1x1x32x32xf32>
    %80 = vector.shape_cast %79 : vector<1x1x32x32xf32> to vector<32x32xf32>
    %cst_131 = arith.constant dense<0.000000e+00> : vector<64x32xf32>
    %81 = tpu.matmul %78, %80, %cst_131 {dimension_numbers = #tpu.dot_dimension_numbers<[1], [0], [0], [1], [0, 0, 1, 1], [], []>} : vector<64x32xf32>, vector<32x32xf32>, vector<64x32xf32> -> vector<64x32xf32>
    %c0_132 = arith.constant 0 : index
    %c0_133 = arith.constant 0 : index
    %82 = vector.load %arg11[%c0_132, %c0_133] : memref<64x32xf32, #tpu.memory_space<vmem>>, vector<64x32xf32>
    %83 = arith.addf %82, %81 : vector<64x32xf32>
    %c0_134 = arith.constant 0 : index
    %c0_135 = arith.constant 0 : index
    %84 = vector.load %arg11[%c0_134, %c0_135] : memref<64x32xf32, #tpu.memory_space<vmem>>, vector<64x32xf32>
    tpu.vector_store %arg11[%c0_134, %c0_135], %83 {strides = array<i32>} : memref<64x32xf32, #tpu.memory_space<vmem>>, vector<64x32xf32>,
    %c0_136 = arith.constant 0 : index
    %c0_137 = arith.constant 0 : index
    %85 = vector.load %arg11[%c0_136, %c0_137] : memref<64x32xf32, #tpu.memory_space<vmem>>, vector<64x32xf32>
    %c0_138 = arith.constant 0 : index
    %c0_139 = arith.constant 0 : index
    %86 = vector.load %arg3[%c0_138, %c0_139] : memref<1x32xf32, #tpu.memory_space<vmem>>, vector<1x32xf32>
    %87 = vector.broadcast %86 : vector<1x32xf32> to vector<64x32xf32>
    %88 = arith.mulf %85, %87 : vector<64x32xf32>
    %c0_140 = arith.constant 0 : index
    %c0_141 = arith.constant 0 : index
    %89 = vector.load %arg4[%c0_140, %c0_141] : memref<1x32xf32, #tpu.memory_space<vmem>>, vector<1x32xf32>
    %90 = vector.broadcast %89 : vector<1x32xf32> to vector<64x32xf32>
    %91 = arith.addf %88, %90 : vector<64x32xf32>
    %cst_142 = arith.constant 0.000000e+00 : f32
    %92 = vector.broadcast %cst_142 : f32 to vector<64x32xf32>
    %93 = arith.maximumf %91, %92 : vector<64x32xf32>
    %94 = vector.shape_cast %93 : vector<64x32xf32> to vector<8x8x32xf32>
    %c1_143 = arith.constant 1 : index
    %c1_144 = arith.constant 1 : index
    %c0_145 = arith.constant 0 : index
    %95 = vector.load %arg10[%c1_143, %c1_144, %c0_145] : memref<10x10x32xf32, #tpu.memory_space<vmem>>, vector<8x8x32xf32>
    tpu.vector_store %arg10[%c1_143, %c1_144, %c0_145], %94 {strides = array<i32>} : memref<10x10x32xf32, #tpu.memory_space<vmem>>, vector<8x8x32xf32>,
    %c0_146 = arith.constant 0 : index
    %c0_147 = arith.constant 0 : index
    %c0_148 = arith.constant 0 : index
    %96 = vector.load %arg10[%c0_146, %c0_147, %c0_148] : memref<10x10x32xf32, #tpu.memory_space<vmem>>, vector<8x8x32xf32>
    %97 = vector.shape_cast %96 : vector<8x8x32xf32> to vector<64x32xf32>
    %c0_149 = arith.constant 0 : index
    %c0_150 = arith.constant 0 : index
    %c0_151 = arith.constant 0 : index
    %c0_152 = arith.constant 0 : index
    %98 = vector.load %arg5[%c0_149, %c0_150, %c0_151, %c0_152] : memref<3x3x32x32xf32, #tpu.memory_space<vmem>>, vector<1x1x32x32xf32>
    %99 = vector.shape_cast %98 : vector<1x1x32x32xf32> to vector<32x32xf32>
    %cst_153 = arith.constant dense<0.000000e+00> : vector<64x32xf32>
    %100 = tpu.matmul %97, %99, %cst_153 {dimension_numbers = #tpu.dot_dimension_numbers<[1], [0], [0], [1], [0, 0, 1, 1], [], []>} : vector<64x32xf32>, vector<32x32xf32>, vector<64x32xf32> -> vector<64x32xf32>
    %c0_154 = arith.constant 0 : index
    %c0_155 = arith.constant 0 : index
    %101 = vector.load %arg11[%c0_154, %c0_155] : memref<64x32xf32, #tpu.memory_space<vmem>>, vector<64x32xf32>
    tpu.vector_store %arg11[%c0_154, %c0_155], %100 {strides = array<i32>} : memref<64x32xf32, #tpu.memory_space<vmem>>, vector<64x32xf32>,
    %c0_156 = arith.constant 0 : index
    %c1_157 = arith.constant 1 : index
    %c0_158 = arith.constant 0 : index
    %102 = vector.load %arg10[%c0_156, %c1_157, %c0_158] : memref<10x10x32xf32, #tpu.memory_space<vmem>>, vector<8x8x32xf32>
    %103 = vector.shape_cast %102 : vector<8x8x32xf32> to vector<64x32xf32>
    %c0_159 = arith.constant 0 : index
    %c1_160 = arith.constant 1 : index
    %c0_161 = arith.constant 0 : index
    %c0_162 = arith.constant 0 : index
    %104 = vector.load %arg5[%c0_159, %c1_160, %c0_161, %c0_162] : memref<3x3x32x32xf32, #tpu.memory_space<vmem>>, vector<1x1x32x32xf32>
    %105 = vector.shape_cast %104 : vector<1x1x32x32xf32> to vector<32x32xf32>
    %cst_163 = arith.constant dense<0.000000e+00> : vector<64x32xf32>
    %106 = tpu.matmul %103, %105, %cst_163 {dimension_numbers = #tpu.dot_dimension_numbers<[1], [0], [0], [1], [0, 0, 1, 1], [], []>} : vector<64x32xf32>, vector<32x32xf32>, vector<64x32xf32> -> vector<64x32xf32>
    %c0_164 = arith.constant 0 : index
    %c0_165 = arith.constant 0 : index
    %107 = vector.load %arg11[%c0_164, %c0_165] : memref<64x32xf32, #tpu.memory_space<vmem>>, vector<64x32xf32>
    %108 = arith.addf %107, %106 : vector<64x32xf32>
    %c0_166 = arith.constant 0 : index
    %c0_167 = arith.constant 0 : index
    %109 = vector.load %arg11[%c0_166, %c0_167] : memref<64x32xf32, #tpu.memory_space<vmem>>, vector<64x32xf32>
    tpu.vector_store %arg11[%c0_166, %c0_167], %108 {strides = array<i32>} : memref<64x32xf32, #tpu.memory_space<vmem>>, vector<64x32xf32>,
    %c0_168 = arith.constant 0 : index
    %c2_169 = arith.constant 2 : index
    %c0_170 = arith.constant 0 : index
    %110 = vector.load %arg10[%c0_168, %c2_169, %c0_170] : memref<10x10x32xf32, #tpu.memory_space<vmem>>, vector<8x8x32xf32>
    %111 = vector.shape_cast %110 : vector<8x8x32xf32> to vector<64x32xf32>
    %c0_171 = arith.constant 0 : index
    %c2_172 = arith.constant 2 : index
    %c0_173 = arith.constant 0 : index
    %c0_174 = arith.constant 0 : index
    %112 = vector.load %arg5[%c0_171, %c2_172, %c0_173, %c0_174] : memref<3x3x32x32xf32, #tpu.memory_space<vmem>>, vector<1x1x32x32xf32>
    %113 = vector.shape_cast %112 : vector<1x1x32x32xf32> to vector<32x32xf32>
    %cst_175 = arith.constant dense<0.000000e+00> : vector<64x32xf32>
    %114 = tpu.matmul %111, %113, %cst_175 {dimension_numbers = #tpu.dot_dimension_numbers<[1], [0], [0], [1], [0, 0, 1, 1], [], []>} : vector<64x32xf32>, vector<32x32xf32>, vector<64x32xf32> -> vector<64x32xf32>
    %c0_176 = arith.constant 0 : index
    %c0_177 = arith.constant 0 : index
    %115 = vector.load %arg11[%c0_176, %c0_177] : memref<64x32xf32, #tpu.memory_space<vmem>>, vector<64x32xf32>
    %116 = arith.addf %115, %114 : vector<64x32xf32>
    %c0_178 = arith.constant 0 : index
    %c0_179 = arith.constant 0 : index
    %117 = vector.load %arg11[%c0_178, %c0_179] : memref<64x32xf32, #tpu.memory_space<vmem>>, vector<64x32xf32>
    tpu.vector_store %arg11[%c0_178, %c0_179], %116 {strides = array<i32>} : memref<64x32xf32, #tpu.memory_space<vmem>>, vector<64x32xf32>,
    %c1_180 = arith.constant 1 : index
    %c0_181 = arith.constant 0 : index
    %c0_182 = arith.constant 0 : index
    %118 = vector.load %arg10[%c1_180, %c0_181, %c0_182] : memref<10x10x32xf32, #tpu.memory_space<vmem>>, vector<8x8x32xf32>
    %119 = vector.shape_cast %118 : vector<8x8x32xf32> to vector<64x32xf32>
    %c1_183 = arith.constant 1 : index
    %c0_184 = arith.constant 0 : index
    %c0_185 = arith.constant 0 : index
    %c0_186 = arith.constant 0 : index
    %120 = vector.load %arg5[%c1_183, %c0_184, %c0_185, %c0_186] : memref<3x3x32x32xf32, #tpu.memory_space<vmem>>, vector<1x1x32x32xf32>
    %121 = vector.shape_cast %120 : vector<1x1x32x32xf32> to vector<32x32xf32>
    %cst_187 = arith.constant dense<0.000000e+00> : vector<64x32xf32>
    %122 = tpu.matmul %119, %121, %cst_187 {dimension_numbers = #tpu.dot_dimension_numbers<[1], [0], [0], [1], [0, 0, 1, 1], [], []>} : vector<64x32xf32>, vector<32x32xf32>, vector<64x32xf32> -> vector<64x32xf32>
    %c0_188 = arith.constant 0 : index
    %c0_189 = arith.constant 0 : index
    %123 = vector.load %arg11[%c0_188, %c0_189] : memref<64x32xf32, #tpu.memory_space<vmem>>, vector<64x32xf32>
    %124 = arith.addf %123, %122 : vector<64x32xf32>
    %c0_190 = arith.constant 0 : index
    %c0_191 = arith.constant 0 : index
    %125 = vector.load %arg11[%c0_190, %c0_191] : memref<64x32xf32, #tpu.memory_space<vmem>>, vector<64x32xf32>
    tpu.vector_store %arg11[%c0_190, %c0_191], %124 {strides = array<i32>} : memref<64x32xf32, #tpu.memory_space<vmem>>, vector<64x32xf32>,
    %c1_192 = arith.constant 1 : index
    %c1_193 = arith.constant 1 : index
    %c0_194 = arith.constant 0 : index
    %126 = vector.load %arg10[%c1_192, %c1_193, %c0_194] : memref<10x10x32xf32, #tpu.memory_space<vmem>>, vector<8x8x32xf32>
    %127 = vector.shape_cast %126 : vector<8x8x32xf32> to vector<64x32xf32>
    %c1_195 = arith.constant 1 : index
    %c1_196 = arith.constant 1 : index
    %c0_197 = arith.constant 0 : index
    %c0_198 = arith.constant 0 : index
    %128 = vector.load %arg5[%c1_195, %c1_196, %c0_197, %c0_198] : memref<3x3x32x32xf32, #tpu.memory_space<vmem>>, vector<1x1x32x32xf32>
    %129 = vector.shape_cast %128 : vector<1x1x32x32xf32> to vector<32x32xf32>
    %cst_199 = arith.constant dense<0.000000e+00> : vector<64x32xf32>
    %130 = tpu.matmul %127, %129, %cst_199 {dimension_numbers = #tpu.dot_dimension_numbers<[1], [0], [0], [1], [0, 0, 1, 1], [], []>} : vector<64x32xf32>, vector<32x32xf32>, vector<64x32xf32> -> vector<64x32xf32>
    %c0_200 = arith.constant 0 : index
    %c0_201 = arith.constant 0 : index
    %131 = vector.load %arg11[%c0_200, %c0_201] : memref<64x32xf32, #tpu.memory_space<vmem>>, vector<64x32xf32>
    %132 = arith.addf %131, %130 : vector<64x32xf32>
    %c0_202 = arith.constant 0 : index
    %c0_203 = arith.constant 0 : index
    %133 = vector.load %arg11[%c0_202, %c0_203] : memref<64x32xf32, #tpu.memory_space<vmem>>, vector<64x32xf32>
    tpu.vector_store %arg11[%c0_202, %c0_203], %132 {strides = array<i32>} : memref<64x32xf32, #tpu.memory_space<vmem>>, vector<64x32xf32>,
    %c1_204 = arith.constant 1 : index
    %c2_205 = arith.constant 2 : index
    %c0_206 = arith.constant 0 : index
    %134 = vector.load %arg10[%c1_204, %c2_205, %c0_206] : memref<10x10x32xf32, #tpu.memory_space<vmem>>, vector<8x8x32xf32>
    %135 = vector.shape_cast %134 : vector<8x8x32xf32> to vector<64x32xf32>
    %c1_207 = arith.constant 1 : index
    %c2_208 = arith.constant 2 : index
    %c0_209 = arith.constant 0 : index
    %c0_210 = arith.constant 0 : index
    %136 = vector.load %arg5[%c1_207, %c2_208, %c0_209, %c0_210] : memref<3x3x32x32xf32, #tpu.memory_space<vmem>>, vector<1x1x32x32xf32>
    %137 = vector.shape_cast %136 : vector<1x1x32x32xf32> to vector<32x32xf32>
    %cst_211 = arith.constant dense<0.000000e+00> : vector<64x32xf32>
    %138 = tpu.matmul %135, %137, %cst_211 {dimension_numbers = #tpu.dot_dimension_numbers<[1], [0], [0], [1], [0, 0, 1, 1], [], []>} : vector<64x32xf32>, vector<32x32xf32>, vector<64x32xf32> -> vector<64x32xf32>
    %c0_212 = arith.constant 0 : index
    %c0_213 = arith.constant 0 : index
    %139 = vector.load %arg11[%c0_212, %c0_213] : memref<64x32xf32, #tpu.memory_space<vmem>>, vector<64x32xf32>
    %140 = arith.addf %139, %138 : vector<64x32xf32>
    %c0_214 = arith.constant 0 : index
    %c0_215 = arith.constant 0 : index
    %141 = vector.load %arg11[%c0_214, %c0_215] : memref<64x32xf32, #tpu.memory_space<vmem>>, vector<64x32xf32>
    tpu.vector_store %arg11[%c0_214, %c0_215], %140 {strides = array<i32>} : memref<64x32xf32, #tpu.memory_space<vmem>>, vector<64x32xf32>,
    %c2_216 = arith.constant 2 : index
    %c0_217 = arith.constant 0 : index
    %c0_218 = arith.constant 0 : index
    %142 = vector.load %arg10[%c2_216, %c0_217, %c0_218] : memref<10x10x32xf32, #tpu.memory_space<vmem>>, vector<8x8x32xf32>
    %143 = vector.shape_cast %142 : vector<8x8x32xf32> to vector<64x32xf32>
    %c2_219 = arith.constant 2 : index
    %c0_220 = arith.constant 0 : index
    %c0_221 = arith.constant 0 : index
    %c0_222 = arith.constant 0 : index
    %144 = vector.load %arg5[%c2_219, %c0_220, %c0_221, %c0_222] : memref<3x3x32x32xf32, #tpu.memory_space<vmem>>, vector<1x1x32x32xf32>
    %145 = vector.shape_cast %144 : vector<1x1x32x32xf32> to vector<32x32xf32>
    %cst_223 = arith.constant dense<0.000000e+00> : vector<64x32xf32>
    %146 = tpu.matmul %143, %145, %cst_223 {dimension_numbers = #tpu.dot_dimension_numbers<[1], [0], [0], [1], [0, 0, 1, 1], [], []>} : vector<64x32xf32>, vector<32x32xf32>, vector<64x32xf32> -> vector<64x32xf32>
    %c0_224 = arith.constant 0 : index
    %c0_225 = arith.constant 0 : index
    %147 = vector.load %arg11[%c0_224, %c0_225] : memref<64x32xf32, #tpu.memory_space<vmem>>, vector<64x32xf32>
    %148 = arith.addf %147, %146 : vector<64x32xf32>
    %c0_226 = arith.constant 0 : index
    %c0_227 = arith.constant 0 : index
    %149 = vector.load %arg11[%c0_226, %c0_227] : memref<64x32xf32, #tpu.memory_space<vmem>>, vector<64x32xf32>
    tpu.vector_store %arg11[%c0_226, %c0_227], %148 {strides = array<i32>} : memref<64x32xf32, #tpu.memory_space<vmem>>, vector<64x32xf32>,
    %c2_228 = arith.constant 2 : index
    %c1_229 = arith.constant 1 : index
    %c0_230 = arith.constant 0 : index
    %150 = vector.load %arg10[%c2_228, %c1_229, %c0_230] : memref<10x10x32xf32, #tpu.memory_space<vmem>>, vector<8x8x32xf32>
    %151 = vector.shape_cast %150 : vector<8x8x32xf32> to vector<64x32xf32>
    %c2_231 = arith.constant 2 : index
    %c1_232 = arith.constant 1 : index
    %c0_233 = arith.constant 0 : index
    %c0_234 = arith.constant 0 : index
    %152 = vector.load %arg5[%c2_231, %c1_232, %c0_233, %c0_234] : memref<3x3x32x32xf32, #tpu.memory_space<vmem>>, vector<1x1x32x32xf32>
    %153 = vector.shape_cast %152 : vector<1x1x32x32xf32> to vector<32x32xf32>
    %cst_235 = arith.constant dense<0.000000e+00> : vector<64x32xf32>
    %154 = tpu.matmul %151, %153, %cst_235 {dimension_numbers = #tpu.dot_dimension_numbers<[1], [0], [0], [1], [0, 0, 1, 1], [], []>} : vector<64x32xf32>, vector<32x32xf32>, vector<64x32xf32> -> vector<64x32xf32>
    %c0_236 = arith.constant 0 : index
    %c0_237 = arith.constant 0 : index
    %155 = vector.load %arg11[%c0_236, %c0_237] : memref<64x32xf32, #tpu.memory_space<vmem>>, vector<64x32xf32>
    %156 = arith.addf %155, %154 : vector<64x32xf32>
    %c0_238 = arith.constant 0 : index
    %c0_239 = arith.constant 0 : index
    %157 = vector.load %arg11[%c0_238, %c0_239] : memref<64x32xf32, #tpu.memory_space<vmem>>, vector<64x32xf32>
    tpu.vector_store %arg11[%c0_238, %c0_239], %156 {strides = array<i32>} : memref<64x32xf32, #tpu.memory_space<vmem>>, vector<64x32xf32>,
    %c2_240 = arith.constant 2 : index
    %c2_241 = arith.constant 2 : index
    %c0_242 = arith.constant 0 : index
    %158 = vector.load %arg10[%c2_240, %c2_241, %c0_242] : memref<10x10x32xf32, #tpu.memory_space<vmem>>, vector<8x8x32xf32>
    %159 = vector.shape_cast %158 : vector<8x8x32xf32> to vector<64x32xf32>
    %c2_243 = arith.constant 2 : index
    %c2_244 = arith.constant 2 : index
    %c0_245 = arith.constant 0 : index
    %c0_246 = arith.constant 0 : index
    %160 = vector.load %arg5[%c2_243, %c2_244, %c0_245, %c0_246] : memref<3x3x32x32xf32, #tpu.memory_space<vmem>>, vector<1x1x32x32xf32>
    %161 = vector.shape_cast %160 : vector<1x1x32x32xf32> to vector<32x32xf32>
    %cst_247 = arith.constant dense<0.000000e+00> : vector<64x32xf32>
    %162 = tpu.matmul %159, %161, %cst_247 {dimension_numbers = #tpu.dot_dimension_numbers<[1], [0], [0], [1], [0, 0, 1, 1], [], []>} : vector<64x32xf32>, vector<32x32xf32>, vector<64x32xf32> -> vector<64x32xf32>
    %c0_248 = arith.constant 0 : index
    %c0_249 = arith.constant 0 : index
    %163 = vector.load %arg11[%c0_248, %c0_249] : memref<64x32xf32, #tpu.memory_space<vmem>>, vector<64x32xf32>
    %164 = arith.addf %163, %162 : vector<64x32xf32>
    %c0_250 = arith.constant 0 : index
    %c0_251 = arith.constant 0 : index
    %165 = vector.load %arg11[%c0_250, %c0_251] : memref<64x32xf32, #tpu.memory_space<vmem>>, vector<64x32xf32>
    tpu.vector_store %arg11[%c0_250, %c0_251], %164 {strides = array<i32>} : memref<64x32xf32, #tpu.memory_space<vmem>>, vector<64x32xf32>,
    %c0_252 = arith.constant 0 : index
    %c0_253 = arith.constant 0 : index
    %c0_254 = arith.constant 0 : index
    %c0_255 = arith.constant 0 : index
    %166 = vector.load %arg1[%c0_252, %c0_253, %c0_254, %c0_255] : memref<1x8x8x32xf32, #tpu.memory_space<vmem>>, vector<1x8x8x32xf32>
    %167 = vector.shape_cast %166 : vector<1x8x8x32xf32> to vector<8x8x32xf32>
    %168 = vector.shape_cast %167 : vector<8x8x32xf32> to vector<64x32xf32>
    %c0_256 = arith.constant 0 : index
    %c0_257 = arith.constant 0 : index
    %169 = vector.load %arg11[%c0_256, %c0_257] : memref<64x32xf32, #tpu.memory_space<vmem>>, vector<64x32xf32>
    %c0_258 = arith.constant 0 : index
    %c0_259 = arith.constant 0 : index
    %170 = vector.load %arg6[%c0_258, %c0_259] : memref<1x32xf32, #tpu.memory_space<vmem>>, vector<1x32xf32>
    %171 = vector.broadcast %170 : vector<1x32xf32> to vector<64x32xf32>
    %172 = arith.mulf %169, %171 : vector<64x32xf32>
    %c0_260 = arith.constant 0 : index
    %c0_261 = arith.constant 0 : index
    %173 = vector.load %arg7[%c0_260, %c0_261] : memref<1x32xf32, #tpu.memory_space<vmem>>, vector<1x32xf32>
    %174 = vector.broadcast %173 : vector<1x32xf32> to vector<64x32xf32>
    %175 = arith.addf %172, %174 : vector<64x32xf32>
    %176 = arith.addf %175, %168 : vector<64x32xf32>
    %cst_262 = arith.constant 0.000000e+00 : f32
    %177 = vector.broadcast %cst_262 : f32 to vector<64x32xf32>
    %178 = arith.maximumf %176, %177 : vector<64x32xf32>
    %179 = vector.shape_cast %178 : vector<64x32xf32> to vector<1x64x32xf32>
    %c0_263 = arith.constant 0 : index
    %c0_264 = arith.constant 0 : index
    %c0_265 = arith.constant 0 : index
    %180 = vector.load %arg8[%c0_263, %c0_264, %c0_265] : memref<1x64x32xf32, #tpu.memory_space<vmem>>, vector<1x64x32xf32>
    tpu.vector_store %arg8[%c0_263, %c0_264, %c0_265], %179 {strides = array<i32>} : memref<1x64x32xf32, #tpu.memory_space<vmem>>, vector<1x64x32xf32>,
    return
  }
  func.func @transform_0(%arg0: i32) -> (i32, i32, i32, i32) {
    %c0_i32 = arith.constant 0 : i32
    %c0_i32_0 = arith.constant 0 : i32
    %c0_i32_1 = arith.constant 0 : i32
    %c0_i32_2 = arith.constant 0 : i32
    return %arg0, %c0_i32, %c0_i32_0, %c0_i32_1 : i32, i32, i32, i32
  }
  func.func @transform_1(%arg0: i32) -> (i32, i32, i32, i32) {
    %c0_i32 = arith.constant 0 : i32
    %c0_i32_0 = arith.constant 0 : i32
    %c0_i32_1 = arith.constant 0 : i32
    %c0_i32_2 = arith.constant 0 : i32
    %c0_i32_3 = arith.constant 0 : i32
    return %c0_i32, %c0_i32_0, %c0_i32_1, %c0_i32_2 : i32, i32, i32, i32
  }
  func.func @transform_2(%arg0: i32) -> (i32, i32) {
    %c0_i32 = arith.constant 0 : i32
    %c0_i32_0 = arith.constant 0 : i32
    %c0_i32_1 = arith.constant 0 : i32
    return %c0_i32, %c0_i32_0 : i32, i32
  }
  func.func @transform_3(%arg0: i32) -> (i32, i32) {
    %c0_i32 = arith.constant 0 : i32
    %c0_i32_0 = arith.constant 0 : i32
    %c0_i32_1 = arith.constant 0 : i32
    return %c0_i32, %c0_i32_0 : i32, i32
  }
  func.func @transform_4(%arg0: i32) -> (i32, i32, i32, i32) {
    %c0_i32 = arith.constant 0 : i32
    %c0_i32_0 = arith.constant 0 : i32
    %c0_i32_1 = arith.constant 0 : i32
    %c0_i32_2 = arith.constant 0 : i32
    %c0_i32_3 = arith.constant 0 : i32
    return %c0_i32, %c0_i32_0, %c0_i32_1, %c0_i32_2 : i32, i32, i32, i32
  }
  func.func @transform_5(%arg0: i32) -> (i32, i32) {
    %c0_i32 = arith.constant 0 : i32
    %c0_i32_0 = arith.constant 0 : i32
    %c0_i32_1 = arith.constant 0 : i32
    return %c0_i32, %c0_i32_0 : i32, i32
  }
  func.func @transform_6(%arg0: i32) -> (i32, i32) {
    %c0_i32 = arith.constant 0 : i32
    %c0_i32_0 = arith.constant 0 : i32
    %c0_i32_1 = arith.constant 0 : i32
    return %c0_i32, %c0_i32_0 : i32, i32
  }
  func.func @transform_7(%arg0: i32) -> (i32, i32, i32) {
    %c0_i32 = arith.constant 0 : i32
    %c0_i32_0 = arith.constant 0 : i32
    %c0_i32_1 = arith.constant 0 : i32
    return %arg0, %c0_i32, %c0_i32_0 : i32, i32, i32
  }
}

</mosaic_0001>

<bundles_post_ra>
// kernel: tile.23
= control target key start
LH: loop header
LB: loop body
LE: loop exit
PB: predicated region body
PF: predicated region fallthrough
CT: control target
= control target key end

     0   :  { %s22_s0 = inlined_call_operand.vmem [shape: f32[4], index: 0, kind: input, shape index: {}]   ;;  %s23_s1 = inlined_call_operand.vmem [shape: f32[8,4], index: 1, kind: output, shape index: {}]  }
   0x1   :  { %v4_v0 = vld [vmem:[%s22_s0] ss:$0 sm:$0xff] }
   0x2   :  { %5 = vst [vmem:[%s23_s1] sm:$0xff] %v4_v0 }

// kernel: tile.24
= control target key start
LH: loop header
LB: loop body
LE: loop exit
PB: predicated region body
PF: predicated region fallthrough
CT: control target
= control target key end

     0   :  { %s67_s10 = smov 28   ;;  %s68_s11 = smov 20   ;;  %vm3_vm0 = vcmask 31744   ;;  %vm9_vm1 = vcmask 261344   ;;  %vm15_vm2 = vcmask 228544   ;;  %vm21_vm3 = vcmask 195744   ;;  %s111_s0 = inlined_call_operand.vmem [shape: f32[8,4], index: 0, kind: input, shape index: {}]   ;;  %s112_s1 = inlined_call_operand.vmem [shape: f32[1,32], index: 1, kind: output, shape index: {}]  }
   0x1   :  { %v53_v0 = vld [vmem:[%s111_s0 + $0x7] sm:$0x1]   ;;  %v55_v1 = vld [vmem:[%s111_s0 + $0x5] sm:$0x1]   ;;  %v57_v2 = vld [vmem:[%s111_s0 + $0x3] sm:$0x1]  }
   0x2   :  { %7 = vrot.lane.b32.xlu0 %v53_v0, %s67_s10  ;;  %19 = vrot.lane.b32.xlu1 %v55_v1, %s68_s11  ;;  %s69_s14 = smov 12   ;;  %v54_v3 = vld [vmem:[%s111_s0 + $0x6] sm:$0x1]   ;;  %v56_v4 = vld [vmem:[%s111_s0 + $0x4] sm:$0x1]   ;;  %s70_s21 = smov 24  }
   0x3   :  { %31 = vrot.lane.b32.xlu2 %v57_v2, %s69_s14  ;;  %v58_v5 = vld [vmem:[%s111_s0 + $0x2] sm:$0x1]   ;;  %s71_s22 = smov 16   ;;  %s72_s23 = smov 8   ;;  %v59_v6 = vld [vmem:[%s111_s0 + $0x1] sm:$0x1]  }
   0x4   :  { %s73_s26 = smov 4   ;;  %v2_v7 = vld [vmem:[%s111_s0] sm:$0x1]   ;;  %vm27_vm4 = vcmask 162944   ;;  %vm33_vm5 = vcmask 130144   ;;  %vm39_vm6 = vcmask 97344  }
   0x5   :  { %4 = vst.msk [vmem:[#allocation0] sm:$0x1] %vm3_vm0, %v2_v7   ;;  %vm45_vm7 = vcmask 64544  }
   0xa   :  { %13 = vrot.lane.b32.xlu0 %v54_v3, %s70_s21  ;;  %25 = vrot.lane.b32.xlu1 %v56_v4, %s71_s22 }
   0xb   :  { %37 = vrot.lane.b32.xlu2 %v58_v5, %s72_s23 }
  0x12   :  { %43 = vrot.lane.b32.xlu0 %v59_v6, %s73_s26 }
  0x5d   :  { %v32_v8 = vpop.permute.xlu2 %31  }
  0x65   :  { %v38_v9 = vpop.permute.xlu2 %37  }
  0x74   :  { %v8_v10 = vpop.permute.xlu0 %7   ;;  %v20_v11 = vpop.permute.xlu1 %19  }
  0x75   :  { %10 = vst.msk [vmem:[#allocation0] sm:$0x1] %vm9_vm1, %v8_v10  }
  0x7c   :  { %v14_v12 = vpop.permute.xlu0 %13   ;;  %v26_v13 = vpop.permute.xlu1 %25  }
  0x7d   :  { %16 = vst.msk [vmem:[#allocation0] sm:$0x1] %vm15_vm2, %v14_v12  }
  0x7e   :  { %22 = vst.msk [vmem:[#allocation0] sm:$0x1] %vm21_vm3, %v20_v11  }
  0x7f   :  { %28 = vst.msk [vmem:[#allocation0] sm:$0x1] %vm27_vm4, %v26_v13  }
  0x80   :  { %34 = vst.msk [vmem:[#allocation0] sm:$0x1] %vm33_vm5, %v32_v8  }
  0x81   :  { %40 = vst.msk [vmem:[#allocation0] sm:$0x1] %vm39_vm6, %v38_v9  }
  0x84   :  { %v44_v14 = vpop.permute.xlu0 %43  }
  0x85   :  { %46 = vst.msk [vmem:[#allocation0] sm:$0x1] %vm45_vm7, %v44_v14  }
  0x8c   :  { %v49_v15 = vld [vmem:[#allocation0] sm:$0x1] }
  0x8d   :  { %52 = vst [vmem:[%s112_s1] sm:$0x1] %v49_v15 }

// kernel: basic_block_forward.1
= control target key start
LH: loop header
LB: loop body
LE: loop exit
PB: predicated region body
PF: predicated region fallthrough
CT: control target
= control target key end

     0   :  { %s2612_s24 = smov 0   ;;  %s3486_s0 = inlined_call_operand.vmem [shape: f32[2,8,8,32], index: 0, kind: input, shape index: {}]   ;;  %s3487_s1 = inlined_call_operand.vmem [shape: f32[3,3,32,32], index: 1, kind: input, shape index: {}]   ;;  %s3488_s2 = inlined_call_operand.vmem [shape: f32[1,32], index: 2, kind: input, shape index: {}]   ;;  %s3489_s3 = inlined_call_operand.vmem [shape: f32[1,32], index: 3, kind: input, shape index: {}]   ;;  %s3490_s4 = inlined_call_operand.vmem [shape: f32[3,3,32,32], index: 4, kind: input, shape index: {}]   ;;  %s3491_s5 = inlined_call_operand.vmem [shape: f32[1,32], index: 5, kind: input, shape index: {}]   ;;  %s3492_s6 = inlined_call_operand.vmem [shape: f32[1,32], index: 6, kind: input, shape index: {}]   ;;  %s3493_s7 = inlined_call_operand.vmem [shape: f32[2,64,32], index: 7, kind: output, shape index: {}]  }
   0x1 LB: > { %s2321_s25 = sadd.s32 4294967295, %s2569_s24   ;;  %p2325_p0 = scmp.ge.s32.totalorder %s2569_s24, 1  ;;  %s2569_s24 = sphi %s2612_s24, %s17_s24  }
   0x2   : > { %p237_p1 = scmp.lt.s32.totalorder %s2569_s24, 3 }
   0x4   : > { %p238_p2 = pnand %p2325_p0, %p237_p1 }
   0x5   : > { %p269_p3 = scmp.lt.s32.totalorder (!%p238_p2), %s2321_s25, 1 }
   0x6   : > { %241 = sbr.rel (%p238_p2) target bundleno = 649 (0x289), region = 48 }
   0xb   : > { %v360_v0 = vld [vmem:[%s3487_s1 + $0x18] sm:$0xff]  ;;  %v359_v1 = vld [vmem:[%s3487_s1 + $0x10] sm:$0xff]  ;;  %vm279_vm0 = vcmask 261120   ;;  %vm286_vm1 = vcmask 253952   ;;  %v2571_v2 = vmov 0.0   ;;  %v358_v5 = vld [vmem:[%s3487_s1 + $0x8] sm:$0xff] }
   0xc   : > { %2542 = vmatpush.msra.mxu2 %v360_v0  ;;  %280 = vst.msk [vmem:[#allocation2] sm:$0xff] %vm279_vm0, %v2571_v2  ;;  %v2341_v3 = vld [vmem:[%s3487_s1 + $0x38] sm:$0xff]  ;;  %v2340_v4 = vld [vmem:[%s3487_s1 + $0x30] sm:$0xff]  ;;  %397 = vmatpush.msra.mxu0 %v360_v0  ;;  %s3495_s25 = smov (!%p269_p3, %s2321_s25), 1  ;;  %v2339_v6 = vld [vmem:[%s3487_s1 + $0x28] sm:$0xff]  ;;  %vm281_vm2 = vcmask 254976  }
   0xd   : > { %291 = vst.msk [vmem:[#allocation2 + $0x40] sm:$0x1] %vm286_vm1, %v2571_v2  ;;  %2546 = vmatpush.msra.mxu3 %v2341_v3  ;;  %483 = vmatpush.msra.mxu1 %v2341_v3  ;;  %v357_v7 = vld [vmem:[%s3487_s1] sm:$0xff]  ;;  %s2540_s17 = sshll.u32 %s3495_s25, 6  ;;  %v2353_v8 = vld [vmem:[%s3487_s1 + $0x58] sm:$0xff]  ;;  %v2352_v13 = vld [vmem:[%s3487_s1 + $0x50] sm:$0xff] }
   0xe   : > { %2543 = vmatpush.msra.mxu2 %v359_v1  ;;  %284 = vst.msk [vmem:[#allocation2 + $0x90] sm:$0xff] %vm279_vm0, %v2571_v2  ;;  %398 = vmatpush.msra.mxu0 %v359_v1  ;;  %s2657_s20 = scalar_lea.vmem %s3486_s0, %s2540_s17  ;;  %v2338_v9 = vld [vmem:[%s3487_s1 + $0x20] sm:$0xff]  ;;  %v2365_v14 = vld [vmem:[%s3487_s1 + $0x78] sm:$0xff]  ;;  %v2351_v15 = vld [vmem:[%s3487_s1 + $0x48] sm:$0xff]  ;;  %s3436_s30 = scalar_lea.vmem %s3493_s7, %s2540_s17 }
   0xf   : > { %288 = vst.msk [vmem:[#allocation2 + $0x10] sm:$0x1] %vm286_vm1, %v2571_v2  ;;  %2547 = vmatpush.msra.mxu3 %v2340_v4  ;;  %484 = vmatpush.msra.mxu1 %v2340_v4  ;;  %v335_v10 = vld [vmem:[%s2657_s20 + $0x18] sm:$0xff]  ;;  %v2364_v16 = vld [vmem:[%s3487_s1 + $0x70] sm:$0xff]  ;;  %v2350_v17 = vld [vmem:[%s3487_s1 + $0x40] sm:$0xff] }
  0x10   : > { %2544 = vmatpush.msra.mxu2 %v358_v5  ;;  %289 = vst.msk [vmem:[#allocation2 + $0x20] sm:$0x1] %vm286_vm1, %v2571_v2  ;;  %399 = vmatpush.msra.mxu0 %v358_v5  ;;  %v2363_v18 = vld [vmem:[%s3487_s1 + $0x68] sm:$0xff]  ;;  %v2377_v19 = vld [vmem:[%s3487_s1 + $0x98] sm:$0xff]  ;;  %v336_v20 = vld [vmem:[%s2657_s20 + $0x20] sm:$0xff] }
  0x11   : > { %290 = vst.msk [vmem:[#allocation2 + $0x30] sm:$0x1] %vm286_vm1, %v2571_v2  ;;  %2548 = vmatpush.msra.mxu3 %v2339_v6  ;;  %485 = vmatpush.msra.mxu1 %v2339_v6  ;;  %v337_v21 = vld [vmem:[%s2657_s20 + $0x28] sm:$0xff]  ;;  %v338_v22 = vld [vmem:[%s2657_s20 + $0x30] sm:$0xff]  ;;  %v332_v23 = vld [vmem:[%s2657_s20] sm:$0xff] }
  0x12   : > { %2545 = vmatpush.msra.mxu2 %v357_v7  ;;  %344 = vst.msk [vmem:[#allocation2 + $0x41] sm:$0xff] %vm279_vm0, %v335_v10  ;;  %400 = vmatpush.msra.mxu0 %v357_v7  ;;  %v2401_v24 = vld [vmem:[%s3487_s1 + $0xd8] sm:$0xff]  ;;  %v2362_v25 = vld [vmem:[%s3487_s1 + $0x60] sm:$0xff]  ;;  %v2376_v26 = vld [vmem:[%s3487_s1 + $0x90] sm:$0xff] }
  0x13   : > { %292 = vst.msk [vmem:[#allocation2 + $0x50] sm:$0x1] %vm286_vm1, %v2571_v2  ;;  %2549 = vmatpush.msra.mxu3 %v2338_v9  ;;  %486 = vmatpush.msra.mxu1 %v2338_v9  ;;  %v2375_v30 = vld [vmem:[%s3487_s1 + $0x88] sm:$0xff]  ;;  %v2413_v32 = vld [vmem:[%s3487_s1 + $0xf8] sm:$0xff]  ;;  %v334_v34 = vld [vmem:[%s2657_s20 + $0x10] sm:$0xff] }
  0x14   : > { %585 = vmatpush.msrb.mxu2 %v2353_v8  ;;  %293 = vst.msk [vmem:[#allocation2 + $0x60] sm:$0x1] %vm286_vm1, %v2571_v2  ;;  %789 = vmatpush.msrb.mxu0 %v2377_v19  ;;  %v333_v31 = vld [vmem:[%s2657_s20 + $0x8] sm:$0xff]  ;;  %v2400_v38 = vld [vmem:[%s3487_s1 + $0xd0] sm:$0xff]  ;;  %v2374_v39 = vld [vmem:[%s3487_s1 + $0x80] sm:$0xff] }
  0x15   : > { %294 = vst.msk [vmem:[#allocation2 + $0x70] sm:$0x1] %vm286_vm1, %v2571_v2  ;;  %687 = vmatpush.msrb.mxu3 %v2365_v14  ;;  %v2412_v44 = vld [vmem:[%s3487_s1 + $0xf0] sm:$0xff]  ;;  %v2425_v45 = vld [vmem:[%s3487_s1 + $0x118] sm:$0xff]  ;;  %v2399_v51 = vld [vmem:[%s3487_s1 + $0xc8] sm:$0xff] }
  0x16   : > { %295 = vst.msk [vmem:[#allocation2 + $0x80] sm:$0x1] %vm286_vm1, %v2571_v2  ;;  %586 = vmatpush.msrb.mxu2 %v2352_v13  ;;  %790 = vmatpush.msrb.mxu0 %v2376_v26  ;;  %v2389_v46 = vld [vmem:[%s3487_s1 + $0xb8] sm:$0xff]  ;;  %v2388_v49 = vld [vmem:[%s3487_s1 + $0xb0] sm:$0xff]  ;;  %v2387_v52 = vld [vmem:[%s3487_s1 + $0xa8] sm:$0xff] }
  0x17   : > { %298 = vst.msk [vmem:[#allocation2 + $0x19] sm:$0x1] %vm286_vm1, %v2571_v2  ;;  %688 = vmatpush.msrb.mxu3 %v2364_v16  ;;  %891 = vmatpush.msrb.mxu1 %v2389_v46  ;;  %v2386_v53 = vld [vmem:[%s3487_s1 + $0xa0] sm:$0xff]  ;;  %v2411_v56 = vld [vmem:[%s3487_s1 + $0xe8] sm:$0xff]  ;;  %v2424_v57 = vld [vmem:[%s3487_s1 + $0x110] sm:$0xff] }
  0x18   : > { %299 = vst.msk [vmem:[#allocation2 + $0x29] sm:$0x1] %vm286_vm1, %v2571_v2  ;;  %587 = vmatpush.msrb.mxu2 %v2351_v15  ;;  %791 = vmatpush.msrb.mxu0 %v2375_v30  ;;  %v2398_v59 = vld [vmem:[%s3487_s1 + $0xc0] sm:$0xff]  ;;  %v2423_v62 = vld [vmem:[%s3487_s1 + $0x108] sm:$0xff]  ;;  %v339_v63 = vld [vmem:[%s2657_s20 + $0x38] sm:$0xff] }
  0x19   : > { %v2683_v11 = vld [vmem:[#allocation2 + $0x40] sm:$0xff]  ;;  %300 = vst.msk [vmem:[#allocation2 + $0x39] sm:$0x1] %vm286_vm1, %v2571_v2  ;;  %689 = vmatpush.msrb.mxu3 %v2363_v18  ;;  %892 = vmatpush.msrb.mxu1 %v2388_v49 }
  0x1a   : > { %2334 = vmatmul.msk.f32.vlgmr.msra.gmra.mxu2 %vm279_vm0, %v2683_v11  ;;  %301 = vst.msk [vmem:[#allocation2 + $0x49] sm:$0x1] %vm286_vm1, %v2571_v2  ;;  %v2695_v12 = vld [vmem:[#allocation2 + $0x41] sm:$0xff]  ;;  %792 = vmatpush.msrb.mxu0 %v2374_v39 }
  0x1b   : > { %302 = vst.msk [vmem:[#allocation2 + $0x59] sm:$0x1] %vm286_vm1, %v2571_v2  ;;  %2346 = vmatmul.msk.f32.vlgmr.msra.gmra.mxu3 %vm279_vm0, %v2695_v12  ;;  %588 = vmatpush.msrb.mxu2 %v2350_v17  ;;  %v2410_v61 = vld [vmem:[%s3487_s1 + $0xe0] sm:$0xff] }
  0x1c   : > { %303 = vst.msk [vmem:[#allocation2 + $0x69] sm:$0x1] %vm286_vm1, %v2571_v2  ;;  %690 = vmatpush.msrb.mxu3 %v2362_v25  ;;  %893 = vmatpush.msrb.mxu1 %v2387_v52 }
  0x1d   : > { %304 = vst.msk [vmem:[#allocation2 + $0x79] sm:$0x1] %vm286_vm1, %v2571_v2  ;;  %994 = vmatpush.msra.mxu2 %v2401_v24 }
  0x1e   : > { %305 = vst.msk [vmem:[#allocation2 + $0x89] sm:$0x1] %vm286_vm1, %v2571_v2  ;;  %1096 = vmatpush.msra.mxu3 %v2413_v32  ;;  %894 = vmatpush.msrb.mxu1 %v2386_v53 }
  0x1f   : > { %307 = vst.msk [vmem:[#allocation3] sm:$0xff] %vm279_vm0, %v2571_v2  ;;  %995 = vmatpush.msra.mxu2 %v2400_v38 }
  0x20   : > { %310 = vst.msk [vmem:[#allocation3 + $0x90] sm:$0xff] %vm279_vm0, %v2571_v2  ;;  %1097 = vmatpush.msra.mxu3 %v2412_v44 }
  0x21   : > { %313 = vst.msk [vmem:[#allocation3 + $0x10] sm:$0x1] %vm286_vm1, %v2571_v2  ;;  %996 = vmatpush.msra.mxu2 %v2399_v51  ;;  %v540_v0 = vld [vmem:[#allocation2 + $0x42] sm:$0xff] }
  0x22   : > { %314 = vst.msk [vmem:[#allocation3 + $0x20] sm:$0x1] %vm286_vm1, %v2571_v2  ;;  %1098 = vmatpush.msra.mxu3 %v2411_v56 }
  0x23   : > { %315 = vst.msk [vmem:[#allocation3 + $0x30] sm:$0x1] %vm286_vm1, %v2571_v2  ;;  %997 = vmatpush.msra.mxu2 %v2398_v59 }
  0x24   : > { %316 = vst.msk [vmem:[#allocation3 + $0x40] sm:$0x1] %vm286_vm1, %v2571_v2  ;;  %1099 = vmatpush.msra.mxu3 %v2410_v61 }
  0x25   : > { %317 = vst.msk [vmem:[#allocation3 + $0x50] sm:$0x1] %vm286_vm1, %v2571_v2 }
  0x26   : > { %318 = vst.msk [vmem:[#allocation3 + $0x60] sm:$0x1] %vm286_vm1, %v2571_v2 }
  0x27   : > { %319 = vst.msk [vmem:[#allocation3 + $0x70] sm:$0x1] %vm286_vm1, %v2571_v2 }
  0x28   : > { %320 = vst.msk [vmem:[#allocation3 + $0x80] sm:$0x1] %vm286_vm1, %v2571_v2 }
  0x29   : > { %323 = vst.msk [vmem:[#allocation3 + $0x19] sm:$0x1] %vm286_vm1, %v2571_v2 }
  0x2a   : > { %324 = vst.msk [vmem:[#allocation3 + $0x29] sm:$0x1] %vm286_vm1, %v2571_v2 }
  0x2b   : > { %325 = vst.msk [vmem:[#allocation3 + $0x39] sm:$0x1] %vm286_vm1, %v2571_v2 }
  0x2c   : > { %326 = vst.msk [vmem:[#allocation3 + $0x49] sm:$0x1] %vm286_vm1, %v2571_v2 }
  0x2d   : > { %327 = vst.msk [vmem:[#allocation3 + $0x59] sm:$0x1] %vm286_vm1, %v2571_v2 }
  0x2e   : > { %328 = vst.msk [vmem:[#allocation3 + $0x69] sm:$0x1] %vm286_vm1, %v2571_v2 }
  0x2f   : > { %329 = vst.msk [vmem:[#allocation3 + $0x79] sm:$0x1] %vm286_vm1, %v2571_v2 }
  0x30   : > { %330 = vst.msk [vmem:[#allocation3 + $0x89] sm:$0x1] %vm286_vm1, %v2571_v2 }
  0x31   : > { %287 = vst.msk [vmem:[#allocation2] sm:$0x1] %vm286_vm1, %v2571_v2 }
  0x32   : > { %296 = vst.msk [vmem:[#allocation2 + $0x90] sm:$0x1] %vm286_vm1, %v2571_v2 }
  0x33   : > { %312 = vst.msk [vmem:[#allocation3] sm:$0x1] %vm286_vm1, %v2571_v2 }
  0x34   : > { %321 = vst.msk [vmem:[#allocation3 + $0x90] sm:$0x1] %vm286_vm1, %v2571_v2 }
  0x35   : > { %345 = vst.msk [vmem:[#allocation2 + $0x51] sm:$0xff] %vm279_vm0, %v336_v20 }
  0x36   : > { %346 = vst.msk [vmem:[#allocation2 + $0x61] sm:$0xff] %vm279_vm0, %v337_v21 }
  0x37   : > { %347 = vst.msk [vmem:[#allocation2 + $0x71] sm:$0xff] %vm279_vm0, %v338_v22 }
  0x38   : > { %v349_v27 = vld [vmem:[#allocation2] sm:$0xff]  ;;  %341 = vst.msk [vmem:[#allocation2 + $0x11] sm:$0xff] %vm279_vm0, %v332_v23 }
  0x39   : > { %2330 = vmatmul.msk.f32.vlgmr.msra.gmra.mxu0 %vm279_vm0, %v349_v27  ;;  %282 = vst.msk [vmem:[#allocation2 + $0x8] sm:$0x3] %vm281_vm2, %v2571_v2  ;;  %v952_v27 = vld [vmem:[#allocation2 + $0x90] sm:$0xff] }
  0x3a   : > { %285 = vst.msk [vmem:[#allocation2 + $0x98] sm:$0x3] %vm281_vm2, %v2571_v2  ;;  %1198 = vmatpush.msra.mxu0 %v2425_v45 }
  0x3b   : > { %297 = vst.msk [vmem:[#allocation2 + $0x9] sm:$0x1] %vm286_vm1, %v2571_v2 }
  0x3c   : > { %v2792_v28 = vld [vmem:[#allocation2 + $0x50] sm:$0xff]  ;;  %308 = vst.msk [vmem:[#allocation3 + $0x8] sm:$0x3] %vm281_vm2, %v2571_v2  ;;  %1199 = vmatpush.msra.mxu0 %v2424_v57 }
  0x3d   : > { %v2794_v29 = vld [vmem:[#allocation2 + $0x51] sm:$0xff]  ;;  %2335 = vmatmul.msk.f32.gmra.mxu2 %vm279_vm0, %v2792_v28  ;;  %311 = vst.msk [vmem:[#allocation3 + $0x98] sm:$0x3] %vm281_vm2, %v2571_v2  ;;  %v2821_v36 = vld [vmem:[#allocation2 + $0x60] sm:$0xff] }
  0x3e   : > { %2347 = vmatmul.msk.f32.gmra.mxu3 %vm279_vm0, %v2794_v29  ;;  %306 = vst.msk [vmem:[#allocation2 + $0x99] sm:$0x1] %vm286_vm1, %v2571_v2  ;;  %v2823_v37 = vld [vmem:[#allocation2 + $0x61] sm:$0xff]  ;;  %v2841_v42 = vld [vmem:[#allocation2 + $0x70] sm:$0xff]  ;;  %1200 = vmatpush.msra.mxu0 %v2423_v62 }
  0x3f   : > { %v350_v33 = vld [vmem:[#allocation2 + $0x10] sm:$0xff]  ;;  %322 = vst.msk [vmem:[#allocation3 + $0x9] sm:$0x1] %vm286_vm1, %v2571_v2  ;;  %v542_v3 = vld [vmem:[#allocation2 + $0x62] sm:$0xff] }
  0x40   : > { %v434_v35 = vld [vmem:[#allocation2 + $0x1] sm:$0xff]  ;;  %331 = vst.msk [vmem:[#allocation3 + $0x99] sm:$0x1] %vm286_vm1, %v2571_v2  ;;  %v435_v40 = vld [vmem:[#allocation2 + $0x11] sm:$0xff] }
  0x41   : > { %2331 = vmatmul.msk.f32.gmra.mxu0 %vm279_vm0, %v350_v33  ;;  %2342 = vmatmul.msk.f32.vlgmr.msra.gmra.mxu1 %vm279_vm0, %v434_v35  ;;  %342 = vst.msk [vmem:[#allocation2 + $0x21] sm:$0xff] %vm279_vm0, %v333_v31  ;;  %v2843_v43 = vld [vmem:[#allocation2 + $0x71] sm:$0xff]  ;;  %v2422_v2 = vld [vmem:[%s3487_s1 + $0x100] sm:$0xff] }
  0x42   : > { %343 = vst.msk [vmem:[#allocation2 + $0x31] sm:$0xff] %vm279_vm0, %v334_v34  ;;  %v536_v50 = vld [vmem:[#allocation2 + $0x2] sm:$0xff]  ;;  %v537_v55 = vld [vmem:[#allocation2 + $0x12] sm:$0xff]  ;;  %1201 = vmatpush.msra.mxu0 %v2422_v2 }
  0x43   : > { %348 = vst.msk [vmem:[#allocation2 + $0x81] sm:$0xff] %vm279_vm0, %v339_v63  ;;  %v541_v1 = vld [vmem:[#allocation2 + $0x52] sm:$0xff] }
  0x44   : > { %v543_v4 = vld [vmem:[#allocation2 + $0x72] sm:$0xff] }
  0x45   : > { %2336 = vmatmul.msk.f32.gmra.mxu2 %vm279_vm0, %v2821_v36  ;;  %v1156_v32 = vld [vmem:[#allocation2 + $0x92] sm:$0xff] }
  0x46   : > { %2348 = vmatmul.msk.f32.gmra.mxu3 %vm279_vm0, %v2823_v37 }
  0x48   : > { %v2836_v41 = vld [vmem:[#allocation2 + $0x20] sm:$0xff] }
  0x49   : > { %2332 = vmatmul.msk.f32.gmra.mxu0 %vm279_vm0, %v2836_v41  ;;  %2343 = vmatmul.msk.f32.gmra.mxu1 %vm279_vm0, %v435_v40  ;;  %v2858_v47 = vld [vmem:[#allocation2 + $0x30] sm:$0xff]  ;;  %v2860_v48 = vld [vmem:[#allocation2 + $0x21] sm:$0xff] }
  0x4a   : > { %v2880_v54 = vld [vmem:[#allocation2 + $0x31] sm:$0xff]  ;;  %v538_v58 = vld [vmem:[#allocation2 + $0x22] sm:$0xff] }
  0x4b   : > { %v539_v60 = vld [vmem:[#allocation2 + $0x32] sm:$0xff]  ;;  %v645_v5 = vld [vmem:[#allocation2 + $0x80] sm:$0xff] }
  0x4c   : > { %v747_v6 = vld [vmem:[#allocation2 + $0x81] sm:$0xff] }
  0x4d   : > { %2337 = vmatmul.msk.f32.gmra.mxu2 %vm279_vm0, %v2841_v42  ;;  %v849_v7 = vld [vmem:[#allocation2 + $0x82] sm:$0xff] }
  0x4e   : > { %2349 = vmatmul.msk.f32.gmra.mxu3 %vm279_vm0, %v2843_v43 }
  0x51   : > { %2333 = vmatmul.msk.f32.gmra.mxu0 %vm279_vm0, %v2858_v47  ;;  %2344 = vmatmul.msk.f32.gmra.mxu1 %vm279_vm0, %v2860_v48 }
  0x55   : > { %2354 = vmatmul.msk.f32.vlgmr.msrb.gmra.mxu2 %vm279_vm0, %v536_v50  ;;  %v1311_v50 = vld [vmem:[%s3490_s4 + $0x18] sm:$0xff] }
  0x56   : > { %2366 = vmatmul.msk.f32.vlgmr.msrb.gmra.mxu3 %vm279_vm0, %v350_v33  ;;  %1348 = vmatpush.msra.mxu1 %v1311_v50  ;;  %v1300_v50 = vld [vmem:[#allocation3] sm:$0xff] }
  0x59   : > { %2345 = vmatmul.msk.f32.gmra.mxu1 %vm279_vm0, %v2880_v54  ;;  %2378 = vmatmul.msk.f32.vlgmr.msrb.gmra.mxu0 %vm279_vm0, %v435_v40 }
  0x5d   : > { %2355 = vmatmul.msk.f32.gmra.mxu2 %vm279_vm0, %v537_v55 }
  0x5e   : > { %2367 = vmatmul.msk.f32.gmra.mxu3 %vm279_vm0, %v2836_v41 }
  0x61   : > { %2379 = vmatmul.msk.f32.gmra.mxu0 %vm279_vm0, %v2860_v48  ;;  %2390 = vmatmul.msk.f32.vlgmr.msrb.gmra.mxu1 %vm279_vm0, %v537_v55 }
  0x65   : > { %2356 = vmatmul.msk.f32.gmra.mxu2 %vm279_vm0, %v538_v58 }
  0x66   : > { %2368 = vmatmul.msk.f32.gmra.mxu3 %vm279_vm0, %v2858_v47 }
  0x69   : > { %2380 = vmatmul.msk.f32.gmra.mxu0 %vm279_vm0, %v2880_v54  ;;  %2391 = vmatmul.msk.f32.gmra.mxu1 %vm279_vm0, %v538_v58 }
  0x6d   : > { %2357 = vmatmul.msk.f32.gmra.mxu2 %vm279_vm0, %v539_v60 }
  0x6e   : > { %2369 = vmatmul.msk.f32.gmra.mxu3 %vm279_vm0, %v2683_v11 }
  0x71   : > { %2381 = vmatmul.msk.f32.gmra.mxu0 %vm279_vm0, %v2695_v12  ;;  %2392 = vmatmul.msk.f32.gmra.mxu1 %vm279_vm0, %v539_v60 }
  0x75   : > { %2358 = vmatmul.msk.f32.gmra.mxu2 %vm279_vm0, %v540_v0 }
  0x76   : > { %2370 = vmatmul.msk.f32.gmra.mxu3 %vm279_vm0, %v2792_v28 }
  0x79   : > { %2382 = vmatmul.msk.f32.gmra.mxu0 %vm279_vm0, %v2794_v29  ;;  %2393 = vmatmul.msk.f32.gmra.mxu1 %vm279_vm0, %v540_v0 }
  0x7d   : > { %2359 = vmatmul.msk.f32.gmra.mxu2 %vm279_vm0, %v541_v1 }
  0x7e   : > { %2371 = vmatmul.msk.f32.gmra.mxu3 %vm279_vm0, %v2821_v36 }
  0x81   : > { %2383 = vmatmul.msk.f32.gmra.mxu0 %vm279_vm0, %v2823_v37  ;;  %2394 = vmatmul.msk.f32.gmra.mxu1 %vm279_vm0, %v541_v1 }
  0x85   : > { %2360 = vmatmul.msk.f32.gmra.mxu2 %vm279_vm0, %v542_v3 }
  0x86   : > { %2372 = vmatmul.msk.f32.gmra.mxu3 %vm279_vm0, %v2841_v42 }
  0x89   : > { %2384 = vmatmul.msk.f32.gmra.mxu0 %vm279_vm0, %v2843_v43  ;;  %2395 = vmatmul.msk.f32.gmra.mxu1 %vm279_vm0, %v542_v3 }
  0x8d   : > { %2361 = vmatmul.msk.f32.gmra.mxu2 %vm279_vm0, %v543_v4 }
  0x8e   : > { %2373 = vmatmul.msk.f32.gmra.mxu3 %vm279_vm0, %v645_v5 }
  0x91   : > { %2385 = vmatmul.msk.f32.gmra.mxu0 %vm279_vm0, %v747_v6  ;;  %2396 = vmatmul.msk.f32.gmra.mxu1 %vm279_vm0, %v543_v4 }
  0x95   : > { %2402 = vmatmul.msk.f32.vlgmr.msra.gmra.mxu2 %vm279_vm0, %v2836_v41 }
  0x96   : > { %2414 = vmatmul.msk.f32.vlgmr.msra.gmra.mxu3 %vm279_vm0, %v2860_v48 }
  0x99   : > { %2426 = vmatmul.msk.f32.vlgmr.msra.gmra.mxu0 %vm279_vm0, %v538_v58  ;;  %2397 = vmatmul.msk.f32.gmra.mxu1 %vm279_vm0, %v849_v7 }
  0x9d   : > { %2403 = vmatmul.msk.f32.gmra.mxu2 %vm279_vm0, %v2858_v47  ;;  %v414_v8 = vpop.f32.mrf.mxu2 }
  0x9e   : > { %2415 = vmatmul.msk.f32.gmra.mxu3 %vm279_vm0, %v2880_v54  ;;  %430 = vst.msk [vmem:[#allocation4 + $0x20] sm:$0xff] %vm279_vm0, %v414_v8  ;;  %v500_v9 = vpop.f32.mrf.mxu3 }
  0xa1   : > { %2427 = vmatmul.msk.f32.gmra.mxu0 %vm279_vm0, %v539_v60 }
  0xa5   : > { %2404 = vmatmul.msk.f32.gmra.mxu2 %vm279_vm0, %v2683_v11  ;;  %v516_v10 = vld [vmem:[#allocation4 + $0x20] sm:$0xff] }
  0xa6   : > { %2416 = vmatmul.msk.f32.gmra.mxu3 %vm279_vm0, %v2695_v12  ;;  %v524_v13 = vadd.f32 %v516_v10, %v500_v9 }
  0xa8   : > { %532 = vst.msk [vmem:[#allocation4 + $0x20] sm:$0xff] %vm279_vm0, %v524_v13 }
  0xa9   : > { %2428 = vmatmul.msk.f32.gmra.mxu0 %vm279_vm0, %v540_v0 }
  0xad   : > { %2405 = vmatmul.msk.f32.gmra.mxu2 %vm279_vm0, %v2792_v28  ;;  %v1054_v28 = vld [vmem:[#allocation2 + $0x91] sm:$0xff] }
  0xae   : > { %2417 = vmatmul.msk.f32.gmra.mxu3 %vm279_vm0, %v2794_v29 }
  0xb1   : > { %2429 = vmatmul.msk.f32.gmra.mxu0 %vm279_vm0, %v541_v1 }
  0xb5   : > { %2406 = vmatmul.msk.f32.gmra.mxu2 %vm279_vm0, %v2821_v36 }
  0xb6   : > { %2418 = vmatmul.msk.f32.gmra.mxu3 %vm279_vm0, %v2823_v37  ;;  %v402_v11 = vpop.f32.mrf.mxu0 }
  0xb7   : > { %426 = vst.msk [vmem:[#allocation4] sm:$0xff] %vm279_vm0, %v402_v11 }
  0xb9   : > { %2430 = vmatmul.msk.f32.gmra.mxu0 %vm279_vm0, %v542_v3 }
  0xbd   : > { %2407 = vmatmul.msk.f32.gmra.mxu2 %vm279_vm0, %v2841_v42 }
  0xbe   : > { %2419 = vmatmul.msk.f32.gmra.mxu3 %vm279_vm0, %v2843_v43  ;;  %v405_v12 = vpop.f32.mrf.mxu0  ;;  %v488_v14 = vpop.f32.mrf.mxu1  ;;  %v512_v15 = vld [vmem:[#allocation4] sm:$0xff] }
  0xbf   : > { %427 = vst.msk [vmem:[#allocation4 + $0x8] sm:$0xff] %vm279_vm0, %v405_v12  ;;  %v520_v16 = vadd.f32 %v512_v15, %v488_v14 }
  0xc0   : > { %v417_v17 = vpop.f32.mrf.mxu2 }
  0xc1   : > { %v503_v18 = vpop.f32.mrf.mxu3  ;;  %431 = vst.msk [vmem:[#allocation4 + $0x28] sm:$0xff] %vm279_vm0, %v417_v17  ;;  %2431 = vmatmul.msk.f32.gmra.mxu0 %vm279_vm0, %v543_v4  ;;  %v618_v17 = vld [vmem:[#allocation4 + $0x20] sm:$0xff] }
  0xc2   : > { %528 = vst.msk [vmem:[#allocation4] sm:$0xff] %vm279_vm0, %v520_v16 }
  0xc5   : > { %2408 = vmatmul.msk.f32.gmra.mxu2 %vm279_vm0, %v645_v5  ;;  %v1310_v5 = vld [vmem:[%s3490_s4 + $0x10] sm:$0xff] }
  0xc6   : > { %2420 = vmatmul.msk.f32.gmra.mxu3 %vm279_vm0, %v747_v6  ;;  %v408_v19 = vpop.f32.mrf.mxu0  ;;  %v491_v20 = vpop.f32.mrf.mxu1  ;;  %v513_v21 = vld [vmem:[#allocation4 + $0x8] sm:$0xff]  ;;  %1349 = vmatpush.msra.mxu1 %v1310_v5 }
  0xc7   : > { %428 = vst.msk [vmem:[#allocation4 + $0x10] sm:$0xff] %vm279_vm0, %v408_v19  ;;  %v521_v22 = vadd.f32 %v513_v21, %v491_v20 }
  0xc8   : > { %v420_v23 = vpop.f32.mrf.mxu2  ;;  %v517_v24 = vld [vmem:[#allocation4 + $0x28] sm:$0xff] }
  0xc9   : > { %v506_v25 = vpop.f32.mrf.mxu3  ;;  %432 = vst.msk [vmem:[#allocation4 + $0x30] sm:$0xff] %vm279_vm0, %v420_v23  ;;  %v525_v26 = vadd.f32 %v517_v24, %v503_v18  ;;  %2432 = vmatmul.msk.f32.gmra.mxu0 %vm279_vm0, %v849_v7  ;;  %v614_v38 = vld [vmem:[#allocation4] sm:$0xff]  ;;  %v2445_v23 = vld [vmem:[%s3490_s4 + $0x38] sm:$0xff] }
  0xca   : > { %529 = vst.msk [vmem:[#allocation4 + $0x8] sm:$0xff] %vm279_vm0, %v521_v22  ;;  %1434 = vmatpush.msrb.mxu2 %v2445_v23 }
  0xcb   : > { %533 = vst.msk [vmem:[#allocation4 + $0x28] sm:$0xff] %vm279_vm0, %v525_v26 }
  0xcd   : > { %2409 = vmatmul.msk.f32.gmra.mxu2 %vm279_vm0, %v952_v27 }
  0xce   : > { %2421 = vmatmul.msk.f32.gmra.mxu3 %vm279_vm0, %v1054_v28  ;;  %v411_v29 = vpop.f32.mrf.mxu0  ;;  %v494_v30 = vpop.f32.mrf.mxu1  ;;  %v514_v31 = vld [vmem:[#allocation4 + $0x10] sm:$0xff] }
  0xcf   : > { %429 = vst.msk [vmem:[#allocation4 + $0x18] sm:$0xff] %vm279_vm0, %v411_v29  ;;  %v522_v33 = vadd.f32 %v514_v31, %v494_v30  ;;  %v1309_v29 = vld [vmem:[%s3490_s4 + $0x8] sm:$0xff] }
  0xd0   : > { %v423_v34 = vpop.f32.mrf.mxu2  ;;  %v518_v35 = vld [vmem:[#allocation4 + $0x30] sm:$0xff]  ;;  %1350 = vmatpush.msra.mxu1 %v1309_v29 }
  0xd1   : > { %v509_v36 = vpop.f32.mrf.mxu3  ;;  %433 = vst.msk [vmem:[#allocation4 + $0x38] sm:$0xff] %vm279_vm0, %v423_v34  ;;  %v526_v37 = vadd.f32 %v518_v35, %v506_v25  ;;  %2433 = vmatmul.msk.f32.gmra.mxu0 %vm279_vm0, %v1156_v32  ;;  %v615_v48 = vld [vmem:[#allocation4 + $0x8] sm:$0xff] }
  0xd2   : > { %530 = vst.msk [vmem:[#allocation4 + $0x10] sm:$0xff] %vm279_vm0, %v522_v33  ;;  %v619_v31 = vld [vmem:[#allocation4 + $0x28] sm:$0xff] }
  0xd3   : > { %534 = vst.msk [vmem:[#allocation4 + $0x30] sm:$0xff] %vm279_vm0, %v526_v37 }
  0xd6   : > { %v497_v39 = vpop.f32.mrf.mxu1  ;;  %v515_v40 = vld [vmem:[#allocation4 + $0x18] sm:$0xff]  ;;  %v794_v41 = vpop.f32.mrf.mxu0 }
  0xd7   : > { %v523_v42 = vadd.f32 %v515_v40, %v497_v39  ;;  %v2457_v39 = vld [vmem:[%s3490_s4 + $0x58] sm:$0xff] }
  0xd8   : > { %v519_v43 = vld [vmem:[#allocation4 + $0x38] sm:$0xff]  ;;  %v590_v44 = vpop.f32.mrf.mxu2  ;;  %1536 = vmatpush.msrb.mxu3 %v2457_v39 }
  0xd9   : > { %v692_v45 = vpop.f32.mrf.mxu3  ;;  %v527_v46 = vadd.f32 %v519_v43, %v509_v36  ;;  %v622_v47 = vadd.f32 %v614_v38, %v590_v44  ;;  %531 = vst.msk [vmem:[#allocation4 + $0x18] sm:$0xff] %vm279_vm0, %v523_v42  ;;  %v616_v57 = vld [vmem:[#allocation4 + $0x10] sm:$0xff] }
  0xdb   : > { %535 = vst.msk [vmem:[#allocation4 + $0x38] sm:$0xff] %vm279_vm0, %v527_v46 }
  0xdc   : > { %630 = vst.msk [vmem:[#allocation4] sm:$0xff] %vm279_vm0, %v622_v47  ;;  %v1308_v47 = vld [vmem:[%s3490_s4] sm:$0xff] }
  0xdd   : > { %1351 = vmatpush.msra.mxu1 %v1308_v47 }
  0xde   : > { %v797_v49 = vpop.f32.mrf.mxu0  ;;  %v896_v56 = vpop.f32.mrf.mxu1  ;;  %2434 = vmatmul.msk.f32.vlgmr.msra.gmra.mxu1 %vm279_vm0, %v1300_v50 }
  0xe0   : > { %v593_v51 = vpop.f32.mrf.mxu2  ;;  %v617_v2 = vld [vmem:[#allocation4 + $0x18] sm:$0xff] }
  0xe1   : > { %v695_v52 = vpop.f32.mrf.mxu3  ;;  %v623_v53 = vadd.f32 %v615_v48, %v593_v51  ;;  %v2443_v48 = vld [vmem:[%s3490_s4 + $0x28] sm:$0xff] }
  0xe3   : > { %631 = vst.msk [vmem:[#allocation4 + $0x8] sm:$0xff] %vm279_vm0, %v623_v53  ;;  %v716_v54 = vld [vmem:[#allocation4] sm:$0xff] }
  0xe4   : > { %v724_v55 = vadd.f32 %v716_v54, %v692_v45  ;;  %v620_v45 = vld [vmem:[#allocation4 + $0x30] sm:$0xff]  ;;  %v1385_v54 = vld [vmem:[#allocation3 + $0x1] sm:$0xff] }
  0xe6   : > { %732 = vst.msk [vmem:[#allocation4] sm:$0xff] %vm279_vm0, %v724_v55  ;;  %v800_v58 = vpop.f32.mrf.mxu0  ;;  %v899_v4 = vpop.f32.mrf.mxu1 }
  0xe8   : > { %v596_v59 = vpop.f32.mrf.mxu2 }
  0xe9   : > { %v698_v60 = vpop.f32.mrf.mxu3  ;;  %v624_v61 = vadd.f32 %v616_v57, %v596_v59 }
  0xea   : > { %v717_v62 = vld [vmem:[#allocation4 + $0x8] sm:$0xff] }
  0xeb   : > { %632 = vst.msk [vmem:[#allocation4 + $0x10] sm:$0xff] %vm279_vm0, %v624_v61  ;;  %v725_v63 = vadd.f32 %v717_v62, %v695_v52  ;;  %v2442_v52 = vld [vmem:[%s3490_s4 + $0x20] sm:$0xff]  ;;  %v621_v61 = vld [vmem:[#allocation4 + $0x38] sm:$0xff] }
  0xed   : > { %733 = vst.msk [vmem:[#allocation4 + $0x8] sm:$0xff] %vm279_vm0, %v725_v63  ;;  %v818_v0 = vld [vmem:[#allocation4] sm:$0xff]  ;;  %v2456_v63 = vld [vmem:[%s3490_s4 + $0x50] sm:$0xff] }
  0xee   : > { %v826_v1 = vadd.f32 %v818_v0, %v794_v41  ;;  %v803_v3 = vpop.f32.mrf.mxu0  ;;  %v902_v20 = vpop.f32.mrf.mxu1  ;;  %v2444_v41 = vld [vmem:[%s3490_s4 + $0x30] sm:$0xff]  ;;  %1537 = vmatpush.msrb.mxu3 %v2456_v63 }
  0xef   : > { %1435 = vmatpush.msrb.mxu2 %v2444_v41  ;;  %v2480_v63 = vld [vmem:[%s3490_s4 + $0x90] sm:$0xff] }
  0xf0   : > { %834 = vst.msk [vmem:[#allocation4] sm:$0xff] %vm279_vm0, %v826_v1  ;;  %v599_v6 = vpop.f32.mrf.mxu2 }
  0xf1   : > { %v701_v7 = vpop.f32.mrf.mxu3  ;;  %v625_v8 = vadd.f32 %v617_v2, %v599_v6  ;;  %1436 = vmatpush.msrb.mxu2 %v2443_v48  ;;  %v2454_v6 = vld [vmem:[%s3490_s4 + $0x40] sm:$0xff] }
  0xf2   : > { %v718_v9 = vld [vmem:[#allocation4 + $0x10] sm:$0xff] }
  0xf3   : > { %633 = vst.msk [vmem:[#allocation4 + $0x18] sm:$0xff] %vm279_vm0, %v625_v8  ;;  %v726_v10 = vadd.f32 %v718_v9, %v698_v60  ;;  %1437 = vmatpush.msrb.mxu2 %v2442_v52  ;;  %v1487_v8 = vld [vmem:[#allocation3 + $0x2] sm:$0xff] }
  0xf4   : > { %v819_v13 = vld [vmem:[#allocation4 + $0x8] sm:$0xff]  ;;  %2446 = vmatmul.msk.f32.vlgmr.msrb.gmra.mxu2 %vm279_vm0, %v1385_v54 }
  0xf5   : > { %734 = vst.msk [vmem:[#allocation4 + $0x10] sm:$0xff] %vm279_vm0, %v726_v10  ;;  %v827_v11 = vadd.f32 %v819_v13, %v797_v49  ;;  %v2469_v10 = vld [vmem:[%s3490_s4 + $0x78] sm:$0xff] }
  0xf6   : > { %v3012_v12 = vpop.f32.mrf.mxu0  ;;  %v905_v36 = vpop.f32.mrf.mxu1  ;;  %1638 = vmatpush.msrb.mxu0 %v2469_v10 }
  0xf7   : > { %835 = vst.msk [vmem:[#allocation4 + $0x8] sm:$0xff] %vm279_vm0, %v827_v11  ;;  %v920_v14 = vld [vmem:[#allocation4] sm:$0xff] }
  0xf8   : > { %v928_v15 = vadd.f32 %v920_v14, %v896_v56  ;;  %v602_v16 = vpop.f32.mrf.mxu2 }
  0xf9   : > { %v704_v18 = vpop.f32.mrf.mxu3  ;;  %v626_v19 = vadd.f32 %v618_v17, %v602_v16 }
  0xfa   : > { %936 = vst.msk [vmem:[#allocation4] sm:$0xff] %vm279_vm0, %v928_v15  ;;  %v719_v21 = vld [vmem:[#allocation4 + $0x18] sm:$0xff] }
  0xfb   : > { %634 = vst.msk [vmem:[#allocation4 + $0x20] sm:$0xff] %vm279_vm0, %v626_v19  ;;  %v727_v22 = vadd.f32 %v719_v21, %v701_v7 }
  0xfc   : > { %v820_v24 = vld [vmem:[#allocation4 + $0x10] sm:$0xff] }
  0xfd   : > { %735 = vst.msk [vmem:[#allocation4 + $0x18] sm:$0xff] %vm279_vm0, %v727_v22  ;;  %v828_v25 = vadd.f32 %v820_v24, %v800_v58 }
  0xfe   : > { %v921_v26 = vld [vmem:[#allocation4 + $0x8] sm:$0xff]  ;;  %v3021_v27 = vpop.f32.mrf.mxu0  ;;  %v908_v57 = vpop.f32.mrf.mxu1 }
  0xff   : > { %836 = vst.msk [vmem:[#allocation4 + $0x10] sm:$0xff] %vm279_vm0, %v828_v25  ;;  %v929_v28 = vadd.f32 %v921_v26, %v899_v4 }
 0x100   : > { %v605_v30 = vpop.f32.mrf.mxu2 }
 0x101   : > { %v707_v32 = vpop.f32.mrf.mxu3  ;;  %937 = vst.msk [vmem:[#allocation4 + $0x8] sm:$0xff] %vm279_vm0, %v929_v28  ;;  %v627_v33 = vadd.f32 %v619_v31, %v605_v30  ;;  %v1023_v14 = vld [vmem:[#allocation4] sm:$0xff]  ;;  %v2467_v31 = vld [vmem:[%s3490_s4 + $0x68] sm:$0xff] }
 0x102   : > { %v720_v34 = vld [vmem:[#allocation4 + $0x20] sm:$0xff] }
 0x103   : > { %635 = vst.msk [vmem:[#allocation4 + $0x28] sm:$0xff] %vm279_vm0, %v627_v33  ;;  %v728_v35 = vadd.f32 %v720_v34, %v704_v18  ;;  %v2466_v34 = vld [vmem:[%s3490_s4 + $0x60] sm:$0xff] }
 0x104   : > { %v821_v37 = vld [vmem:[#allocation4 + $0x18] sm:$0xff] }
 0x105   : > { %736 = vst.msk [vmem:[#allocation4 + $0x20] sm:$0xff] %vm279_vm0, %v728_v35  ;;  %v829_v38 = vadd.f32 %v821_v37, %v803_v3  ;;  %v2455_v3 = vld [vmem:[%s3490_s4 + $0x48] sm:$0xff] }
 0x106   : > { %v922_v40 = vld [vmem:[#allocation4 + $0x10] sm:$0xff]  ;;  %v3037_v43 = vpop.f32.mrf.mxu0  ;;  %1538 = vmatpush.msrb.mxu3 %v2455_v3  ;;  %v911_v11 = vpop.f32.mrf.mxu1 }
 0x107   : > { %837 = vst.msk [vmem:[#allocation4 + $0x18] sm:$0xff] %vm279_vm0, %v829_v38  ;;  %v930_v42 = vadd.f32 %v922_v40, %v902_v20  ;;  %v2481_v38 = vld [vmem:[%s3490_s4 + $0x98] sm:$0xff] }
 0x108   : > { %v608_v44 = vpop.f32.mrf.mxu2  ;;  %1539 = vmatpush.msrb.mxu3 %v2454_v6  ;;  %v1024_v25 = vld [vmem:[#allocation4 + $0x8] sm:$0xff]  ;;  %1740 = vmatpush.msrb.mxu1 %v2481_v38 }
 0x109   : > { %v710_v46 = vpop.f32.mrf.mxu3  ;;  %938 = vst.msk [vmem:[#allocation4 + $0x10] sm:$0xff] %vm279_vm0, %v930_v42  ;;  %v628_v49 = vadd.f32 %v620_v45, %v608_v44  ;;  %2458 = vmatmul.msk.f32.vlgmr.msrb.gmra.mxu3 %vm279_vm0, %v1487_v8 }
 0x10a   : > { %v721_v51 = vld [vmem:[#allocation4 + $0x28] sm:$0xff]  ;;  %1741 = vmatpush.msrb.mxu1 %v2480_v63 }
 0x10b   : > { %636 = vst.msk [vmem:[#allocation4 + $0x30] sm:$0xff] %vm279_vm0, %v628_v49  ;;  %v729_v53 = vadd.f32 %v721_v51, %v707_v32 }
 0x10c   : > { %v822_v55 = vld [vmem:[#allocation4 + $0x20] sm:$0xff] }
 0x10d   : > { %737 = vst.msk [vmem:[#allocation4 + $0x28] sm:$0xff] %vm279_vm0, %v729_v53  ;;  %v830_v56 = vadd.f32 %v822_v55, %v3012_v12 }
 0x10e   : > { %v923_v58 = vld [vmem:[#allocation4 + $0x18] sm:$0xff]  ;;  %v815_v1 = vpop.f32.mrf.mxu0  ;;  %v914_v30 = vpop.f32.mrf.mxu1 }
 0x10f   : > { %838 = vst.msk [vmem:[#allocation4 + $0x20] sm:$0xff] %vm279_vm0, %v830_v56  ;;  %v931_v59 = vadd.f32 %v923_v58, %v905_v36  ;;  %v3103_v58 = vld [vmem:[%s3488_s2] ss:$0 sm:$0xff] }
 0x110   : > { %v611_v60 = vpop.f32.mrf.mxu2  ;;  %v1025_v41 = vld [vmem:[#allocation4 + $0x10] sm:$0xff] }
 0x111   : > { %v713_v62 = vpop.f32.mrf.mxu3  ;;  %939 = vst.msk [vmem:[#allocation4 + $0x18] sm:$0xff] %vm279_vm0, %v931_v59  ;;  %v629_v0 = vadd.f32 %v621_v61, %v611_v60  ;;  %v3109_v61 = vld [vmem:[%s3489_s3] ss:$0 sm:$0xff] }
 0x112   : > { %v722_v2 = vld [vmem:[#allocation4 + $0x30] sm:$0xff] }
 0x113   : > { %637 = vst.msk [vmem:[#allocation4 + $0x38] sm:$0xff] %vm279_vm0, %v629_v0  ;;  %v730_v4 = vadd.f32 %v722_v2, %v710_v46 }
 0x114   : > { %v823_v5 = vld [vmem:[#allocation4 + $0x28] sm:$0xff] }
 0x115   : > { %738 = vst.msk [vmem:[#allocation4 + $0x30] sm:$0xff] %vm279_vm0, %v730_v4  ;;  %v831_v7 = vadd.f32 %v823_v5, %v3021_v27  ;;  %v2468_v27 = vld [vmem:[%s3490_s4 + $0x70] sm:$0xff] }
 0x116   : > { %v924_v9 = vld [vmem:[#allocation4 + $0x20] sm:$0xff]  ;;  %v1203_v19 = vpop.f32.mrf.mxu0  ;;  %1639 = vmatpush.msrb.mxu0 %v2468_v27  ;;  %v917_v47 = vpop.f32.mrf.mxu1 }
 0x117   : > { %839 = vst.msk [vmem:[#allocation4 + $0x28] sm:$0xff] %vm279_vm0, %v831_v7  ;;  %v932_v13 = vadd.f32 %v924_v9, %v908_v57 }
 0x118   : > { %v999_v12 = vpop.f32.mrf.mxu2  ;;  %1640 = vmatpush.msrb.mxu0 %v2467_v31  ;;  %v1026_v53 = vld [vmem:[#allocation4 + $0x18] sm:$0xff] }
 0x119   : > { %v1101_v15 = vpop.f32.mrf.mxu3  ;;  %940 = vst.msk [vmem:[#allocation4 + $0x20] sm:$0xff] %vm279_vm0, %v932_v13  ;;  %v1031_v16 = vadd.f32 %v1023_v14, %v999_v12  ;;  %v2493_v12 = vld [vmem:[%s3490_s4 + $0xb8] sm:$0xff] }
 0x11a   : > { %v723_v17 = vld [vmem:[#allocation4 + $0x38] sm:$0xff]  ;;  %1641 = vmatpush.msrb.mxu0 %v2466_v34  ;;  %1842 = vmatpush.msra.mxu2 %v2493_v12 }
 0x11b   : > { %1039 = vst.msk [vmem:[#allocation4] sm:$0xff] %vm279_vm0, %v1031_v16  ;;  %v731_v18 = vadd.f32 %v723_v17, %v713_v62  ;;  %v2505_v31 = vld [vmem:[%s3490_s4 + $0xd8] sm:$0xff] }
 0x11c   : > { %v824_v20 = vld [vmem:[#allocation4 + $0x30] sm:$0xff]  ;;  %1945 = vmatpush.msra.mxu3 %v2505_v31 }
 0x11d   : > { %739 = vst.msk [vmem:[#allocation4 + $0x38] sm:$0xff] %vm279_vm0, %v731_v18  ;;  %v832_v21 = vadd.f32 %v824_v20, %v3037_v43 }
 0x11e   : > { %v925_v22 = vld [vmem:[#allocation4 + $0x28] sm:$0xff]  ;;  %v1206_v36 = vpop.f32.mrf.mxu0 }
 0x11f   : > { %840 = vst.msk [vmem:[#allocation4 + $0x30] sm:$0xff] %vm279_vm0, %v832_v21  ;;  %v933_v23 = vadd.f32 %v925_v22, %v911_v11 }
 0x120   : > { %v1002_v24 = vpop.f32.mrf.mxu2  ;;  %v1027_v2 = vld [vmem:[#allocation4 + $0x20] sm:$0xff] }
 0x121   : > { %v1104_v26 = vpop.f32.mrf.mxu3  ;;  %941 = vst.msk [vmem:[#allocation4 + $0x28] sm:$0xff] %vm279_vm0, %v933_v23  ;;  %v1032_v28 = vadd.f32 %v1024_v25, %v1002_v24 }
 0x122   : > { %v1125_v29 = vld [vmem:[#allocation4] sm:$0xff] }
 0x123   : > { %1040 = vst.msk [vmem:[#allocation4 + $0x8] sm:$0xff] %vm279_vm0, %v1032_v28  ;;  %v1133_v32 = vadd.f32 %v1125_v29, %v1101_v15 }
 0x124   : > { %v825_v33 = vld [vmem:[#allocation4 + $0x38] sm:$0xff] }
 0x125   : > { %1141 = vst.msk [vmem:[#allocation4] sm:$0xff] %vm279_vm0, %v1133_v32  ;;  %v833_v35 = vadd.f32 %v825_v33, %v815_v1 }
 0x126   : > { %v926_v37 = vld [vmem:[#allocation4 + $0x30] sm:$0xff]  ;;  %v1209_v51 = vpop.f32.mrf.mxu0 }
 0x127   : > { %841 = vst.msk [vmem:[#allocation4 + $0x38] sm:$0xff] %vm279_vm0, %v833_v35  ;;  %v934_v39 = vadd.f32 %v926_v37, %v914_v30  ;;  %v2479_v30 = vld [vmem:[%s3490_s4 + $0x88] sm:$0xff] }
 0x128   : > { %v1005_v40 = vpop.f32.mrf.mxu2  ;;  %v1028_v16 = vld [vmem:[#allocation4 + $0x28] sm:$0xff]  ;;  %1742 = vmatpush.msrb.mxu1 %v2479_v30 }
 0x129   : > { %v1107_v42 = vpop.f32.mrf.mxu3  ;;  %942 = vst.msk [vmem:[#allocation4 + $0x30] sm:$0xff] %vm279_vm0, %v934_v39  ;;  %v1033_v43 = vadd.f32 %v1025_v41, %v1005_v40 }
 0x12a   : > { %v1126_v44 = vld [vmem:[#allocation4 + $0x8] sm:$0xff] }
 0x12b   : > { %1041 = vst.msk [vmem:[#allocation4 + $0x10] sm:$0xff] %vm279_vm0, %v1033_v43  ;;  %v1134_v45 = vadd.f32 %v1126_v44, %v1104_v26 }
 0x12c   : > { %v1227_v46 = vld [vmem:[#allocation4] sm:$0xff] }
 0x12d   : > { %1142 = vst.msk [vmem:[#allocation4 + $0x8] sm:$0xff] %vm279_vm0, %v1134_v45  ;;  %v1235_v48 = vadd.f32 %v1227_v46, %v1203_v19 }
 0x12e   : > { %v927_v49 = vld [vmem:[#allocation4 + $0x38] sm:$0xff]  ;;  %v1212_v7 = vpop.f32.mrf.mxu0 }
 0x12f   : > { %1243 = vst.msk [vmem:[#allocation4] sm:$0xff] %vm279_vm0, %v1235_v48  ;;  %v935_v50 = vadd.f32 %v927_v49, %v917_v47  ;;  %v2492_v49 = vld [vmem:[%s3490_s4 + $0xb0] sm:$0xff] }
 0x130   : > { %v1008_v52 = vpop.f32.mrf.mxu2  ;;  %v1029_v34 = vld [vmem:[#allocation4 + $0x30] sm:$0xff]  ;;  %1843 = vmatpush.msra.mxu2 %v2492_v49 }
 0x131   : > { %v1110_v54 = vpop.f32.mrf.mxu3  ;;  %943 = vst.msk [vmem:[#allocation4 + $0x38] sm:$0xff] %vm279_vm0, %v935_v50  ;;  %v1034_v55 = vadd.f32 %v1026_v53, %v1008_v52  ;;  %v2478_v50 = vld [vmem:[%s3490_s4 + $0x80] sm:$0xff] }
 0x132   : > { %v1127_v56 = vld [vmem:[#allocation4 + $0x10] sm:$0xff]  ;;  %1743 = vmatpush.msrb.mxu1 %v2478_v50 }
 0x133   : > { %1042 = vst.msk [vmem:[#allocation4 + $0x18] sm:$0xff] %vm279_vm0, %v1034_v55  ;;  %v1135_v57 = vadd.f32 %v1127_v56, %v1107_v42 }
 0x134   : > { %v1228_v59 = vld [vmem:[#allocation4 + $0x8] sm:$0xff] }
 0x135   : > { %1143 = vst.msk [vmem:[#allocation4 + $0x10] sm:$0xff] %vm279_vm0, %v1135_v57  ;;  %v1236_v60 = vadd.f32 %v1228_v59, %v1206_v36 }
 0x136   : > { %v1251_v62 = vld [vmem:[#allocation4] sm:$0xff]  ;;  %v1215_v24 = vpop.f32.mrf.mxu0 }
 0x137   : > { %1244 = vst.msk [vmem:[#allocation4 + $0x8] sm:$0xff] %vm279_vm0, %v1236_v60  ;;  %v1263_v0 = vmul.f32 %v3103_v58, %v1251_v62 }
 0x138   : > { %v1011_v1 = vpop.f32.mrf.mxu2  ;;  %v1030_v53 = vld [vmem:[#allocation4 + $0x38] sm:$0xff] }
 0x139   : > { %v1035_v3 = vadd.f32 %v1027_v2, %v1011_v1  ;;  %v1275_v4 = vadd.f32 %v3109_v61, %v1263_v0  ;;  %v1113_v6 = vpop.f32.mrf.mxu3 }
 0x13a   : > { %v1128_v5 = vld [vmem:[#allocation4 + $0x18] sm:$0xff] }
 0x13b   : > { %1043 = vst.msk [vmem:[#allocation4 + $0x20] sm:$0xff] %vm279_vm0, %v1035_v3  ;;  %v1136_v8 = vadd.f32 %v1128_v5, %v1110_v54  ;;  %v1283_v9 = vmax.f32 %v1275_v4, 0.0  ;;  %v2517_v54 = vld [vmem:[%s3490_s4 + $0xf8] sm:$0xff]  ;;  %v2491_v5 = vld [vmem:[%s3490_s4 + $0xa8] sm:$0xff] }
 0x13c   : > { %v1229_v10 = vld [vmem:[#allocation4 + $0x10] sm:$0xff]  ;;  %2047 = vmatpush.msra.mxu0 %v2517_v54  ;;  %1844 = vmatpush.msra.mxu2 %v2491_v5 }
 0x13d   : > { %1144 = vst.msk [vmem:[#allocation4 + $0x18] sm:$0xff] %vm279_vm0, %v1136_v8  ;;  %v1237_v13 = vadd.f32 %v1229_v10, %v1209_v51  ;;  %v2504_v51 = vld [vmem:[%s3490_s4 + $0xd0] sm:$0xff]  ;;  %v2502_v10 = vld [vmem:[%s3490_s4 + $0xc0] sm:$0xff] }
 0x13e   : > { %v1252_v11 = vld [vmem:[#allocation4 + $0x8] sm:$0xff]  ;;  %1292 = vst.msk [vmem:[#allocation3 + $0x11] sm:$0xff] %vm279_vm0, %v1283_v9  ;;  %v1218_v47 = vpop.f32.mrf.mxu0  ;;  %1946 = vmatpush.msra.mxu3 %v2504_v51 }
 0x13f   : > { %1245 = vst.msk [vmem:[#allocation4 + $0x10] sm:$0xff] %vm279_vm0, %v1237_v13  ;;  %v1264_v14 = vmul.f32 %v3103_v58, %v1252_v11 }
 0x140   : > { %v1014_v15 = vpop.f32.mrf.mxu2 }
 0x141   : > { %v1036_v17 = vadd.f32 %v1028_v16, %v1014_v15  ;;  %v1276_v18 = vadd.f32 %v3109_v61, %v1264_v14  ;;  %v1116_v23 = vpop.f32.mrf.mxu3 }
 0x142   : > { %v1129_v19 = vld [vmem:[#allocation4 + $0x20] sm:$0xff] }
 0x143   : > { %1044 = vst.msk [vmem:[#allocation4 + $0x28] sm:$0xff] %vm279_vm0, %v1036_v17  ;;  %v1137_v20 = vadd.f32 %v1129_v19, %v1113_v6  ;;  %v1284_v21 = vmax.f32 %v1276_v18, 0.0  ;;  %v2503_v6 = vld [vmem:[%s3490_s4 + $0xc8] sm:$0xff] }
 0x144   : > { %v1230_v22 = vld [vmem:[#allocation4 + $0x18] sm:$0xff]  ;;  %1947 = vmatpush.msra.mxu3 %v2503_v6 }
 0x145   : > { %1145 = vst.msk [vmem:[#allocation4 + $0x20] sm:$0xff] %vm279_vm0, %v1137_v20  ;;  %v1238_v25 = vadd.f32 %v1230_v22, %v1212_v7  ;;  %v1301_v26 = vld [vmem:[#allocation3 + $0x10] sm:$0xff]  ;;  %v2490_v7 = vld [vmem:[%s3490_s4 + $0xa0] sm:$0xff]  ;;  %v2529_v22 = vld [vmem:[%s3490_s4 + $0x118] sm:$0xff] }
 0x146   : > { %v3128_v27 = vld [vmem:[#allocation3 + $0x11] sm:$0xff]  ;;  %2435 = vmatmul.msk.f32.gmra.mxu1 %vm279_vm0, %v1301_v26  ;;  %1293 = vst.msk [vmem:[#allocation3 + $0x21] sm:$0xff] %vm279_vm0, %v1284_v21  ;;  %2470 = vmatmul.msk.f32.vlgmr.msrb.gmra.mxu0 %vm279_vm0, %v1301_v26  ;;  %v1221_v9 = vpop.f32.mrf.mxu0  ;;  %v2514_v26 = vld [vmem:[%s3490_s4 + $0xe0] sm:$0xff] }
 0x147   : > { %v3130_v28 = vld [vmem:[#allocation3 + $0x12] sm:$0xff]  ;;  %2447 = vmatmul.msk.f32.gmra.mxu2 %vm279_vm0, %v3128_v27  ;;  %1246 = vst.msk [vmem:[#allocation4 + $0x18] sm:$0xff] %vm279_vm0, %v1238_v25  ;;  %1948 = vmatpush.msra.mxu3 %v2502_v10 }
 0x148   : > { %v1253_v29 = vld [vmem:[#allocation4 + $0x10] sm:$0xff]  ;;  %2459 = vmatmul.msk.f32.gmra.mxu3 %vm279_vm0, %v3130_v28  ;;  %v1017_v33 = vpop.f32.mrf.mxu2  ;;  %1845 = vmatpush.msra.mxu2 %v2490_v7 }
 0x149   : > { %v1265_v32 = vmul.f32 %v3103_v58, %v1253_v29  ;;  %v1037_v35 = vadd.f32 %v1029_v34, %v1017_v33  ;;  %v1119_v46 = vpop.f32.mrf.mxu3  ;;  %2149 = vmatpush.msra.mxu1 %v2529_v22 }
 0x14a   : > { %v1130_v37 = vld [vmem:[#allocation4 + $0x28] sm:$0xff] }
 0x14b   : > { %v1277_v36 = vadd.f32 %v3109_v61, %v1265_v32  ;;  %1045 = vst.msk [vmem:[#allocation4 + $0x30] sm:$0xff] %vm279_vm0, %v1037_v35  ;;  %v1138_v38 = vadd.f32 %v1130_v37, %v1116_v23  ;;  %v2516_v23 = vld [vmem:[%s3490_s4 + $0xf0] sm:$0xff] }
 0x14c   : > { %v1231_v40 = vld [vmem:[#allocation4 + $0x20] sm:$0xff]  ;;  %2048 = vmatpush.msra.mxu0 %v2516_v23 }
 0x14d   : > { %v1285_v39 = vmax.f32 %v1277_v36, 0.0  ;;  %1146 = vst.msk [vmem:[#allocation4 + $0x28] sm:$0xff] %vm279_vm0, %v1138_v38  ;;  %v1239_v41 = vadd.f32 %v1231_v40, %v1215_v24  ;;  %v3150_v42 = vld [vmem:[#allocation3 + $0x20] sm:$0xff]  ;;  %v2515_v24 = vld [vmem:[%s3490_s4 + $0xe8] sm:$0xff] }
 0x14e   : > { %v3152_v43 = vld [vmem:[#allocation3 + $0x21] sm:$0xff]  ;;  %v1254_v45 = vld [vmem:[#allocation4 + $0x18] sm:$0xff]  ;;  %2436 = vmatmul.msk.f32.gmra.mxu1 %vm279_vm0, %v3150_v42  ;;  %2471 = vmatmul.msk.f32.gmra.mxu0 %vm279_vm0, %v3150_v42  ;;  %v1224_v29 = vpop.f32.mrf.mxu0 }
 0x14f   : > { %v3154_v44 = vld [vmem:[#allocation3 + $0x22] sm:$0xff]  ;;  %2448 = vmatmul.msk.f32.gmra.mxu2 %vm279_vm0, %v3152_v43  ;;  %1294 = vst.msk [vmem:[#allocation3 + $0x31] sm:$0xff] %vm279_vm0, %v1285_v39  ;;  %v1266_v48 = vmul.f32 %v3103_v58, %v1254_v45  ;;  %2049 = vmatpush.msra.mxu0 %v2515_v24 }
 0x150   : > { %1247 = vst.msk [vmem:[#allocation4 + $0x20] sm:$0xff] %vm279_vm0, %v1239_v41  ;;  %2460 = vmatmul.msk.f32.gmra.mxu3 %vm279_vm0, %v3154_v44  ;;  %v1020_v52 = vpop.f32.mrf.mxu2 }
 0x151   : > { %v1038_v55 = vadd.f32 %v1030_v53, %v1020_v52  ;;  %v1278_v56 = vadd.f32 %v3109_v61, %v1266_v48  ;;  %v1122_v8 = vpop.f32.mrf.mxu3  ;;  %2050 = vmatpush.msra.mxu0 %v2514_v26  ;;  %v2528_v48 = vld [vmem:[%s3490_s4 + $0x110] sm:$0xff] }
 0x152   : > { %v1131_v57 = vld [vmem:[#allocation4 + $0x30] sm:$0xff]  ;;  %2150 = vmatpush.msra.mxu1 %v2528_v48 }
 0x153   : > { %1046 = vst.msk [vmem:[#allocation4 + $0x38] sm:$0xff] %vm279_vm0, %v1038_v55  ;;  %v1139_v59 = vadd.f32 %v1131_v57, %v1119_v46  ;;  %v1286_v60 = vmax.f32 %v1278_v56, 0.0 }
 0x154   : > { %v1232_v62 = vld [vmem:[#allocation4 + $0x28] sm:$0xff] }
 0x155   : > { %1147 = vst.msk [vmem:[#allocation4 + $0x30] sm:$0xff] %vm279_vm0, %v1139_v59  ;;  %v1240_v63 = vadd.f32 %v1232_v62, %v1218_v47  ;;  %v1903_v59 = vld [vmem:[#allocation3 + $0x90] sm:$0xff] }
 0x156   : > { %v3182_v0 = vld [vmem:[#allocation3 + $0x30] sm:$0xff]  ;;  %1295 = vst.msk [vmem:[#allocation3 + $0x41] sm:$0xff] %vm279_vm0, %v1286_v60 }
 0x157   : > { %v3184_v1 = vld [vmem:[#allocation3 + $0x31] sm:$0xff]  ;;  %v1255_v3 = vld [vmem:[#allocation4 + $0x20] sm:$0xff]  ;;  %2437 = vmatmul.msk.f32.gmra.mxu1 %vm279_vm0, %v3182_v0  ;;  %1248 = vst.msk [vmem:[#allocation4 + $0x28] sm:$0xff] %vm279_vm0, %v1240_v63  ;;  %2472 = vmatmul.msk.f32.gmra.mxu0 %vm279_vm0, %v3182_v0 }
 0x158   : > { %v3186_v2 = vld [vmem:[#allocation3 + $0x32] sm:$0xff]  ;;  %2449 = vmatmul.msk.f32.gmra.mxu2 %vm279_vm0, %v3184_v1  ;;  %v1267_v4 = vmul.f32 %v3103_v58, %v1255_v3 }
 0x159   : > { %2461 = vmatmul.msk.f32.gmra.mxu3 %vm279_vm0, %v3186_v2  ;;  %v2005_v63 = vld [vmem:[#allocation3 + $0x91] sm:$0xff] }
 0x15a   : > { %v1279_v13 = vadd.f32 %v3109_v61, %v1267_v4  ;;  %v1132_v11 = vld [vmem:[#allocation4 + $0x38] sm:$0xff] }
 0x15b   : > { %v1140_v12 = vadd.f32 %v1132_v11, %v1122_v8 }
 0x15c   : > { %v1287_v14 = vmax.f32 %v1279_v13, 0.0  ;;  %v1233_v15 = vld [vmem:[#allocation4 + $0x30] sm:$0xff] }
 0x15d   : > { %1148 = vst.msk [vmem:[#allocation4 + $0x38] sm:$0xff] %vm279_vm0, %v1140_v12  ;;  %v1241_v16 = vadd.f32 %v1233_v15, %v1221_v9  ;;  %v3213_v17 = vld [vmem:[#allocation3 + $0x40] sm:$0xff] }
 0x15e   : > { %v3215_v18 = vld [vmem:[#allocation3 + $0x41] sm:$0xff]  ;;  %1296 = vst.msk [vmem:[#allocation3 + $0x51] sm:$0xff] %vm279_vm0, %v1287_v14 }
 0x15f   : > { %v3217_v19 = vld [vmem:[#allocation3 + $0x42] sm:$0xff]  ;;  %2438 = vmatmul.msk.f32.gmra.mxu1 %vm279_vm0, %v3213_v17  ;;  %1249 = vst.msk [vmem:[#allocation4 + $0x30] sm:$0xff] %vm279_vm0, %v1241_v16  ;;  %2473 = vmatmul.msk.f32.gmra.mxu0 %vm279_vm0, %v3213_v17 }
 0x160   : > { %v1256_v20 = vld [vmem:[#allocation4 + $0x28] sm:$0xff]  ;;  %2450 = vmatmul.msk.f32.gmra.mxu2 %vm279_vm0, %v3215_v18 }
 0x161   : > { %2462 = vmatmul.msk.f32.gmra.mxu3 %vm279_vm0, %v3217_v19  ;;  %v1268_v21 = vmul.f32 %v3103_v58, %v1256_v20 }
 0x163   : > { %v1280_v25 = vadd.f32 %v3109_v61, %v1268_v21 }
 0x164   : > { %v1234_v31 = vld [vmem:[#allocation4 + $0x38] sm:$0xff] }
 0x165   : > { %v1288_v30 = vmax.f32 %v1280_v25, 0.0  ;;  %v1242_v32 = vadd.f32 %v1234_v31, %v1224_v29  ;;  %v1305_v33 = vld [vmem:[#allocation3 + $0x50] sm:$0xff] }
 0x166   : > { %v3243_v34 = vld [vmem:[#allocation3 + $0x51] sm:$0xff] }
 0x167   : > { %v3245_v35 = vld [vmem:[#allocation3 + $0x52] sm:$0xff]  ;;  %1297 = vst.msk [vmem:[#allocation3 + $0x61] sm:$0xff] %vm279_vm0, %v1288_v30  ;;  %2439 = vmatmul.msk.f32.gmra.mxu1 %vm279_vm0, %v1305_v33  ;;  %2474 = vmatmul.msk.f32.gmra.mxu0 %vm279_vm0, %v1305_v33 }
 0x168   : > { %v1257_v36 = vld [vmem:[#allocation4 + $0x30] sm:$0xff]  ;;  %2451 = vmatmul.msk.f32.gmra.mxu2 %vm279_vm0, %v3243_v34  ;;  %1250 = vst.msk [vmem:[#allocation4 + $0x38] sm:$0xff] %vm279_vm0, %v1242_v32 }
 0x169   : > { %2463 = vmatmul.msk.f32.gmra.mxu3 %vm279_vm0, %v3245_v35  ;;  %v1269_v37 = vmul.f32 %v3103_v58, %v1257_v36 }
 0x16b   : > { %v1281_v38 = vadd.f32 %v3109_v61, %v1269_v37 }
 0x16d   : > { %v1289_v39 = vmax.f32 %v1281_v38, 0.0 }
 0x16e   : > { %v1306_v40 = vld [vmem:[#allocation3 + $0x60] sm:$0xff] }
 0x16f   : > { %v1391_v41 = vld [vmem:[#allocation3 + $0x61] sm:$0xff]  ;;  %1298 = vst.msk [vmem:[#allocation3 + $0x71] sm:$0xff] %vm279_vm0, %v1289_v39  ;;  %v1258_v46 = vld [vmem:[#allocation4 + $0x38] sm:$0xff]  ;;  %2440 = vmatmul.msk.f32.gmra.mxu1 %vm279_vm0, %v1306_v40  ;;  %2475 = vmatmul.msk.f32.gmra.mxu0 %vm279_vm0, %v1306_v40 }
 0x170   : > { %v3257_v45 = vld [vmem:[#allocation3 + $0x62] sm:$0xff]  ;;  %2452 = vmatmul.msk.f32.gmra.mxu2 %vm279_vm0, %v1391_v41  ;;  %v1270_v47 = vmul.f32 %v3103_v58, %v1258_v46 }
 0x171   : > { %2464 = vmatmul.msk.f32.gmra.mxu3 %vm279_vm0, %v3257_v45 }
 0x172   : > { %v1282_v49 = vadd.f32 %v3109_v61, %v1270_v47  ;;  %v2527_v61 = vld [vmem:[%s3490_s4 + $0x108] sm:$0xff] }
 0x173   : > { %2151 = vmatpush.msra.mxu1 %v2527_v61 }
 0x174   : > { %v1290_v50 = vmax.f32 %v1282_v49, 0.0 }
 0x176   : > { %v1307_v51 = vld [vmem:[#allocation3 + $0x70] sm:$0xff]  ;;  %1299 = vst.msk [vmem:[#allocation3 + $0x81] sm:$0xff] %vm279_vm0, %v1290_v50 }
 0x177   : > { %v1392_v52 = vld [vmem:[#allocation3 + $0x71] sm:$0xff]  ;;  %2441 = vmatmul.msk.f32.gmra.mxu1 %vm279_vm0, %v1307_v51  ;;  %2476 = vmatmul.msk.f32.gmra.mxu0 %vm279_vm0, %v1307_v51 }
 0x178   : > { %v3270_v53 = vld [vmem:[#allocation3 + $0x72] sm:$0xff]  ;;  %2453 = vmatmul.msk.f32.gmra.mxu2 %vm279_vm0, %v1392_v52 }
 0x179   : > { %2465 = vmatmul.msk.f32.gmra.mxu3 %vm279_vm0, %v3270_v53 }
 0x17d   : > { %v1596_v58 = vld [vmem:[#allocation3 + $0x80] sm:$0xff] }
 0x17e   : > { %v1698_v60 = vld [vmem:[#allocation3 + $0x81] sm:$0xff] }
 0x17f   : > { %2482 = vmatmul.msk.f32.vlgmr.msrb.gmra.mxu1 %vm279_vm0, %v3128_v27  ;;  %2477 = vmatmul.msk.f32.gmra.mxu0 %vm279_vm0, %v1596_v58  ;;  %v1353_v27 = vpop.f32.mrf.mxu1  ;;  %v3334_v62 = vld [vmem:[#allocation3 + $0x82] sm:$0xff] }
 0x180   : > { %2494 = vmatmul.msk.f32.vlgmr.msra.gmra.mxu2 %vm279_vm0, %v3130_v28  ;;  %1377 = vst.msk [vmem:[#allocation4] sm:$0xff] %vm279_vm0, %v1353_v27  ;;  %v2526_v28 = vld [vmem:[%s3490_s4 + $0x100] sm:$0xff]  ;;  %v2107_v27 = vld [vmem:[#allocation3 + $0x92] sm:$0xff] }
 0x181   : > { %2506 = vmatmul.msk.f32.vlgmr.msra.gmra.mxu3 %vm279_vm0, %v3150_v42  ;;  %v1439_v42 = vpop.f32.mrf.mxu2  ;;  %2152 = vmatpush.msra.mxu1 %v2526_v28 }
 0x187   : > { %2483 = vmatmul.msk.f32.gmra.mxu1 %vm279_vm0, %v3152_v43  ;;  %2518 = vmatmul.msk.f32.vlgmr.msra.gmra.mxu0 %vm279_vm0, %v3152_v43  ;;  %v1463_v43 = vld [vmem:[#allocation4] sm:$0xff] }
 0x188   : > { %2495 = vmatmul.msk.f32.gmra.mxu2 %vm279_vm0, %v3154_v44  ;;  %v1471_v54 = vadd.f32 %v1463_v43, %v1439_v42 }
 0x189   : > { %2507 = vmatmul.msk.f32.gmra.mxu3 %vm279_vm0, %v3182_v0 }
 0x18a   : > { %1479 = vst.msk [vmem:[#allocation4] sm:$0xff] %vm279_vm0, %v1471_v54 }
 0x18c   : > { %v1541_v55 = vpop.f32.mrf.mxu3 }
 0x18f   : > { %2484 = vmatmul.msk.f32.gmra.mxu1 %vm279_vm0, %v3184_v1  ;;  %2519 = vmatmul.msk.f32.gmra.mxu0 %vm279_vm0, %v3184_v1 }
 0x190   : > { %2496 = vmatmul.msk.f32.gmra.mxu2 %vm279_vm0, %v3186_v2 }
 0x191   : > { %2508 = vmatmul.msk.f32.gmra.mxu3 %vm279_vm0, %v3213_v17  ;;  %v1565_v56 = vld [vmem:[#allocation4] sm:$0xff] }
 0x192   : > { %v1573_v57 = vadd.f32 %v1565_v56, %v1541_v55 }
 0x194   : > { %1581 = vst.msk [vmem:[#allocation4] sm:$0xff] %vm279_vm0, %v1573_v57 }
 0x197   : > { %2485 = vmatmul.msk.f32.gmra.mxu1 %vm279_vm0, %v3215_v18  ;;  %2520 = vmatmul.msk.f32.gmra.mxu0 %vm279_vm0, %v3215_v18 }
 0x198   : > { %2497 = vmatmul.msk.f32.gmra.mxu2 %vm279_vm0, %v3217_v19 }
 0x199   : > { %2509 = vmatmul.msk.f32.gmra.mxu3 %vm279_vm0, %v1305_v33 }
 0x19b   : > { %v1667_v0 = vld [vmem:[#allocation4] sm:$0xff] }
 0x19f   : > { %2486 = vmatmul.msk.f32.gmra.mxu1 %vm279_vm0, %v3243_v34  ;;  %2521 = vmatmul.msk.f32.gmra.mxu0 %vm279_vm0, %v3243_v34 }
 0x1a0   : > { %2498 = vmatmul.msk.f32.gmra.mxu2 %vm279_vm0, %v3245_v35 }
 0x1a1   : > { %2510 = vmatmul.msk.f32.gmra.mxu3 %vm279_vm0, %v1306_v40 }
 0x1a7   : > { %2487 = vmatmul.msk.f32.gmra.mxu1 %vm279_vm0, %v1391_v41  ;;  %2522 = vmatmul.msk.f32.gmra.mxu0 %vm279_vm0, %v1391_v41 }
 0x1a8   : > { %2499 = vmatmul.msk.f32.gmra.mxu2 %vm279_vm0, %v3257_v45 }
 0x1a9   : > { %2511 = vmatmul.msk.f32.gmra.mxu3 %vm279_vm0, %v1307_v51 }
 0x1af   : > { %2488 = vmatmul.msk.f32.gmra.mxu1 %vm279_vm0, %v1392_v52  ;;  %2523 = vmatmul.msk.f32.gmra.mxu0 %vm279_vm0, %v1392_v52 }
 0x1b0   : > { %2500 = vmatmul.msk.f32.gmra.mxu2 %vm279_vm0, %v3270_v53 }
 0x1b1   : > { %2512 = vmatmul.msk.f32.gmra.mxu3 %vm279_vm0, %v1596_v58 }
 0x1b7   : > { %2489 = vmatmul.msk.f32.gmra.mxu1 %vm279_vm0, %v1698_v60  ;;  %2524 = vmatmul.msk.f32.gmra.mxu0 %vm279_vm0, %v1698_v60 }
 0x1b8   : > { %2501 = vmatmul.msk.f32.gmra.mxu2 %vm279_vm0, %v3334_v62 }
 0x1b9   : > { %2513 = vmatmul.msk.f32.gmra.mxu3 %vm279_vm0, %v1903_v59 }
 0x1bf   : > { %2530 = vmatmul.msk.f32.vlgmr.msra.gmra.mxu1 %vm279_vm0, %v3154_v44  ;;  %2525 = vmatmul.msk.f32.gmra.mxu0 %vm279_vm0, %v2005_v63 }
 0x1c3   : > { %v1356_v1 = vpop.f32.mrf.mxu1  ;;  %v1643_v3 = vpop.f32.mrf.mxu0 }
 0x1c4   : > { %1378 = vst.msk [vmem:[#allocation4 + $0x8] sm:$0xff] %vm279_vm0, %v1356_v1  ;;  %v1675_v4 = vadd.f32 %v1667_v0, %v1643_v3 }
 0x1c6   : > { %1683 = vst.msk [vmem:[#allocation4] sm:$0xff] %vm279_vm0, %v1675_v4 }
 0x1c7   : > { %2531 = vmatmul.msk.f32.gmra.mxu1 %vm279_vm0, %v3186_v2 }
 0x1ca   : > { %v1442_v5 = vpop.f32.mrf.mxu2 }
 0x1cb   : > { %v1544_v6 = vpop.f32.mrf.mxu3  ;;  %v1464_v7 = vld [vmem:[#allocation4 + $0x8] sm:$0xff]  ;;  %v1359_v8 = vpop.f32.mrf.mxu1 }
 0x1cc   : > { %v1472_v9 = vadd.f32 %v1464_v7, %v1442_v5  ;;  %1379 = vst.msk [vmem:[#allocation4 + $0x10] sm:$0xff] %vm279_vm0, %v1359_v8  ;;  %v1646_v44 = vpop.f32.mrf.mxu0 }
 0x1cd   : > { %v1769_v63 = vld [vmem:[#allocation4] sm:$0xff] }
 0x1ce   : > { %1480 = vst.msk [vmem:[#allocation4 + $0x8] sm:$0xff] %vm279_vm0, %v1472_v9 }
 0x1cf   : > { %2532 = vmatmul.msk.f32.gmra.mxu1 %vm279_vm0, %v3217_v19 }
 0x1d2   : > { %v1445_v10 = vpop.f32.mrf.mxu2 }
 0x1d3   : > { %v1547_v13 = vpop.f32.mrf.mxu3  ;;  %v1465_v11 = vld [vmem:[#allocation4 + $0x10] sm:$0xff] }
 0x1d4   : > { %v1362_v12 = vpop.f32.mrf.mxu1  ;;  %v1473_v2 = vadd.f32 %v1465_v11, %v1445_v10  ;;  %v1649_v14 = vpop.f32.mrf.mxu0 }
 0x1d5   : > { %1380 = vst.msk [vmem:[#allocation4 + $0x18] sm:$0xff] %vm279_vm0, %v1362_v12  ;;  %v1566_v15 = vld [vmem:[#allocation4 + $0x8] sm:$0xff] }
 0x1d6   : > { %v1574_v16 = vadd.f32 %v1566_v15, %v1544_v6  ;;  %1481 = vst.msk [vmem:[#allocation4 + $0x10] sm:$0xff] %vm279_vm0, %v1473_v2 }
 0x1d7   : > { %2533 = vmatmul.msk.f32.gmra.mxu1 %vm279_vm0, %v3245_v35 }
 0x1d8   : > { %1582 = vst.msk [vmem:[#allocation4 + $0x8] sm:$0xff] %vm279_vm0, %v1574_v16 }
 0x1db   : > { %v1448_v17 = vpop.f32.mrf.mxu2 }
 0x1dc   : > { %v1550_v18 = vpop.f32.mrf.mxu3  ;;  %v1466_v19 = vld [vmem:[#allocation4 + $0x18] sm:$0xff]  ;;  %v1365_v20 = vpop.f32.mrf.mxu1 }
 0x1dd   : > { %v1474_v21 = vadd.f32 %v1466_v19, %v1448_v17  ;;  %1381 = vst.msk [vmem:[#allocation4 + $0x20] sm:$0xff] %vm279_vm0, %v1365_v20  ;;  %v1652_v22 = vpop.f32.mrf.mxu0  ;;  %v1567_v23 = vld [vmem:[#allocation4 + $0x10] sm:$0xff] }
 0x1de   : > { %v1575_v24 = vadd.f32 %v1567_v23, %v1547_v13 }
 0x1df   : > { %1482 = vst.msk [vmem:[#allocation4 + $0x18] sm:$0xff] %vm279_vm0, %v1474_v21  ;;  %2534 = vmatmul.msk.f32.gmra.mxu1 %vm279_vm0, %v3257_v45  ;;  %v1668_v25 = vld [vmem:[#allocation4 + $0x8] sm:$0xff] }
 0x1e0   : > { %v1676_v26 = vadd.f32 %v1668_v25, %v1646_v44  ;;  %1583 = vst.msk [vmem:[#allocation4 + $0x10] sm:$0xff] %vm279_vm0, %v1575_v24 }
 0x1e2   : > { %1684 = vst.msk [vmem:[#allocation4 + $0x8] sm:$0xff] %vm279_vm0, %v1676_v26 }
 0x1e3   : > { %v1451_v29 = vpop.f32.mrf.mxu2 }
 0x1e4   : > { %v1553_v30 = vpop.f32.mrf.mxu3  ;;  %v1467_v31 = vld [vmem:[#allocation4 + $0x20] sm:$0xff]  ;;  %v1368_v32 = vpop.f32.mrf.mxu1 }
 0x1e5   : > { %v1475_v33 = vadd.f32 %v1467_v31, %v1451_v29  ;;  %1382 = vst.msk [vmem:[#allocation4 + $0x28] sm:$0xff] %vm279_vm0, %v1368_v32  ;;  %v1655_v34 = vpop.f32.mrf.mxu0 }
 0x1e6   : > { %v1568_v35 = vld [vmem:[#allocation4 + $0x18] sm:$0xff] }
 0x1e7   : > { %v1576_v36 = vadd.f32 %v1568_v35, %v1550_v18  ;;  %1483 = vst.msk [vmem:[#allocation4 + $0x20] sm:$0xff] %vm279_vm0, %v1475_v33  ;;  %2535 = vmatmul.msk.f32.gmra.mxu1 %vm279_vm0, %v3270_v53  ;;  %v1669_v37 = vld [vmem:[#allocation4 + $0x10] sm:$0xff] }
 0x1e8   : > { %v1677_v38 = vadd.f32 %v1669_v37, %v1649_v14 }
 0x1e9   : > { %1584 = vst.msk [vmem:[#allocation4 + $0x18] sm:$0xff] %vm279_vm0, %v1576_v36  ;;  %v1770_v10 = vld [vmem:[#allocation4 + $0x8] sm:$0xff] }
 0x1ea   : > { %1685 = vst.msk [vmem:[#allocation4 + $0x10] sm:$0xff] %vm279_vm0, %v1677_v38 }
 0x1eb   : > { %v1454_v39 = vpop.f32.mrf.mxu2 }
 0x1ec   : > { %v1556_v40 = vpop.f32.mrf.mxu3  ;;  %v1468_v41 = vld [vmem:[#allocation4 + $0x28] sm:$0xff]  ;;  %v1371_v45 = vpop.f32.mrf.mxu1 }
 0x1ed   : > { %v1476_v46 = vadd.f32 %v1468_v41, %v1454_v39  ;;  %1383 = vst.msk [vmem:[#allocation4 + $0x30] sm:$0xff] %vm279_vm0, %v1371_v45  ;;  %v1658_v47 = vpop.f32.mrf.mxu0 }
 0x1ee   : > { %v1569_v48 = vld [vmem:[#allocation4 + $0x20] sm:$0xff] }
 0x1ef   : > { %v1577_v49 = vadd.f32 %v1569_v48, %v1553_v30  ;;  %1484 = vst.msk [vmem:[#allocation4 + $0x28] sm:$0xff] %vm279_vm0, %v1476_v46  ;;  %2536 = vmatmul.msk.f32.gmra.mxu1 %vm279_vm0, %v3334_v62 }
 0x1f0   : > { %v1670_v50 = vld [vmem:[#allocation4 + $0x18] sm:$0xff] }
 0x1f1   : > { %v1678_v51 = vadd.f32 %v1670_v50, %v1652_v22  ;;  %1585 = vst.msk [vmem:[#allocation4 + $0x20] sm:$0xff] %vm279_vm0, %v1577_v49  ;;  %v1771_v21 = vld [vmem:[#allocation4 + $0x10] sm:$0xff] }
 0x1f3   : > { %v1457_v52 = vpop.f32.mrf.mxu2  ;;  %1686 = vst.msk [vmem:[#allocation4 + $0x18] sm:$0xff] %vm279_vm0, %v1678_v51 }
 0x1f4   : > { %v1559_v53 = vpop.f32.mrf.mxu3  ;;  %v1469_v58 = vld [vmem:[#allocation4 + $0x30] sm:$0xff]  ;;  %v1374_v61 = vpop.f32.mrf.mxu1 }
 0x1f5   : > { %v1477_v28 = vadd.f32 %v1469_v58, %v1457_v52  ;;  %1384 = vst.msk [vmem:[#allocation4 + $0x38] sm:$0xff] %vm279_vm0, %v1374_v61  ;;  %v1661_v54 = vpop.f32.mrf.mxu0 }
 0x1f6   : > { %v1570_v42 = vld [vmem:[#allocation4 + $0x28] sm:$0xff] }
 0x1f7   : > { %v1578_v43 = vadd.f32 %v1570_v42, %v1556_v40  ;;  %1485 = vst.msk [vmem:[#allocation4 + $0x30] sm:$0xff] %vm279_vm0, %v1477_v28  ;;  %2537 = vmatmul.msk.f32.gmra.mxu1 %vm279_vm0, %v2107_v27 }
 0x1f8   : > { %v1671_v55 = vld [vmem:[#allocation4 + $0x20] sm:$0xff] }
 0x1f9   : > { %v1679_v56 = vadd.f32 %v1671_v55, %v1655_v34  ;;  %1586 = vst.msk [vmem:[#allocation4 + $0x28] sm:$0xff] %vm279_vm0, %v1578_v43 }
 0x1fa   : > { %v1772_v33 = vld [vmem:[#allocation4 + $0x18] sm:$0xff] }
 0x1fb   : > { %v1460_v57 = vpop.f32.mrf.mxu2  ;;  %1687 = vst.msk [vmem:[#allocation4 + $0x20] sm:$0xff] %vm279_vm0, %v1679_v56 }
 0x1fc   : > { %v1562_v59 = vpop.f32.mrf.mxu3  ;;  %v1470_v60 = vld [vmem:[#allocation4 + $0x38] sm:$0xff]  ;;  %v1745_v62 = vpop.f32.mrf.mxu1 }
 0x1fd   : > { %v1478_v0 = vadd.f32 %v1470_v60, %v1460_v57  ;;  %v1777_v1 = vadd.f32 %v1769_v63, %v1745_v62  ;;  %v1664_v7 = vpop.f32.mrf.mxu0 }
 0x1fe   : > { %v1571_v3 = vld [vmem:[#allocation4 + $0x30] sm:$0xff] }
 0x1ff   : > { %v1579_v4 = vadd.f32 %v1571_v3, %v1559_v53  ;;  %1486 = vst.msk [vmem:[#allocation4 + $0x38] sm:$0xff] %vm279_vm0, %v1478_v0 }
 0x200   : > { %v1672_v5 = vld [vmem:[#allocation4 + $0x28] sm:$0xff]  ;;  %1785 = vst.msk [vmem:[#allocation4] sm:$0xff] %vm279_vm0, %v1777_v1 }
 0x201   : > { %v1680_v6 = vadd.f32 %v1672_v5, %v1658_v47  ;;  %1587 = vst.msk [vmem:[#allocation4 + $0x30] sm:$0xff] %vm279_vm0, %v1579_v4 }
 0x202   : > { %v1773_v48 = vld [vmem:[#allocation4 + $0x20] sm:$0xff] }
 0x203   : > { %v1847_v8 = vpop.f32.mrf.mxu2  ;;  %1688 = vst.msk [vmem:[#allocation4 + $0x28] sm:$0xff] %vm279_vm0, %v1680_v6 }
 0x204   : > { %v1950_v9 = vpop.f32.mrf.mxu3  ;;  %v1748_v44 = vpop.f32.mrf.mxu1 }
 0x205   : > { %v1778_v13 = vadd.f32 %v1770_v10, %v1748_v44  ;;  %v2052_v18 = vpop.f32.mrf.mxu0 }
 0x206   : > { %v1572_v11 = vld [vmem:[#allocation4 + $0x38] sm:$0xff] }
 0x207   : > { %v1580_v12 = vadd.f32 %v1572_v11, %v1562_v59  ;;  %v1871_v2 = vld [vmem:[#allocation4] sm:$0xff]  ;;  %1786 = vst.msk [vmem:[#allocation4 + $0x8] sm:$0xff] %vm279_vm0, %v1778_v13 }
 0x208   : > { %v1673_v14 = vld [vmem:[#allocation4 + $0x30] sm:$0xff]  ;;  %v1879_v15 = vadd.f32 %v1871_v2, %v1847_v8 }
 0x209   : > { %v1681_v16 = vadd.f32 %v1673_v14, %v1661_v54  ;;  %1588 = vst.msk [vmem:[#allocation4 + $0x38] sm:$0xff] %vm279_vm0, %v1580_v12 }
 0x20a   : > { %1887 = vst.msk [vmem:[#allocation4] sm:$0xff] %vm279_vm0, %v1879_v15  ;;  %v1774_v54 = vld [vmem:[#allocation4 + $0x28] sm:$0xff] }
 0x20b   : > { %v1850_v17 = vpop.f32.mrf.mxu2  ;;  %1689 = vst.msk [vmem:[#allocation4 + $0x30] sm:$0xff] %vm279_vm0, %v1681_v16 }
 0x20c   : > { %v1953_v19 = vpop.f32.mrf.mxu3  ;;  %v1751_v20 = vpop.f32.mrf.mxu1 }
 0x20d   : > { %v1779_v22 = vadd.f32 %v1771_v21, %v1751_v20  ;;  %v2055_v34 = vpop.f32.mrf.mxu0 }
 0x20e   : > { %v1872_v23 = vld [vmem:[#allocation4 + $0x8] sm:$0xff] }
 0x20f   : > { %v1880_v24 = vadd.f32 %v1872_v23, %v1850_v17  ;;  %1787 = vst.msk [vmem:[#allocation4 + $0x10] sm:$0xff] %vm279_vm0, %v1779_v22 }
 0x210   : > { %v1674_v25 = vld [vmem:[#allocation4 + $0x38] sm:$0xff] }
 0x211   : > { %v1682_v26 = vadd.f32 %v1674_v25, %v1664_v7  ;;  %v1974_v29 = vld [vmem:[#allocation4] sm:$0xff]  ;;  %1888 = vst.msk [vmem:[#allocation4 + $0x8] sm:$0xff] %vm279_vm0, %v1880_v24 }
 0x212   : > { %v1982_v30 = vadd.f32 %v1974_v29, %v1950_v9  ;;  %v1775_v5 = vld [vmem:[#allocation4 + $0x30] sm:$0xff] }
 0x213   : > { %v1853_v31 = vpop.f32.mrf.mxu2  ;;  %1690 = vst.msk [vmem:[#allocation4 + $0x38] sm:$0xff] %vm279_vm0, %v1682_v26 }
 0x214   : > { %1990 = vst.msk [vmem:[#allocation4] sm:$0xff] %vm279_vm0, %v1982_v30  ;;  %v1754_v32 = vpop.f32.mrf.mxu1  ;;  %v1956_v35 = vpop.f32.mrf.mxu3 }
 0x215   : > { %v1780_v36 = vadd.f32 %v1772_v33, %v1754_v32  ;;  %v2058_v51 = vpop.f32.mrf.mxu0 }
 0x216   : > { %v1873_v37 = vld [vmem:[#allocation4 + $0x10] sm:$0xff] }
 0x217   : > { %v1881_v38 = vadd.f32 %v1873_v37, %v1853_v31  ;;  %1788 = vst.msk [vmem:[#allocation4 + $0x18] sm:$0xff] %vm279_vm0, %v1780_v36  ;;  %v3418_v37 = vld [vmem:[%s3491_s5] ss:$0 sm:$0xff] }
 0x218   : > { %v1975_v39 = vld [vmem:[#allocation4 + $0x8] sm:$0xff] }
 0x219   : > { %v1983_v40 = vadd.f32 %v1975_v39, %v1953_v19  ;;  %1889 = vst.msk [vmem:[#allocation4 + $0x10] sm:$0xff] %vm279_vm0, %v1881_v38 }
 0x21a   : > { %v1776_v15 = vld [vmem:[#allocation4 + $0x38] sm:$0xff] }
 0x21b   : > { %v1856_v41 = vpop.f32.mrf.mxu2  ;;  %v2076_v45 = vld [vmem:[#allocation4] sm:$0xff]  ;;  %1991 = vst.msk [vmem:[#allocation4 + $0x8] sm:$0xff] %vm279_vm0, %v1983_v40 }
 0x21c   : > { %v2084_v46 = vadd.f32 %v2076_v45, %v2052_v18  ;;  %v1757_v47 = vpop.f32.mrf.mxu1  ;;  %v1959_v53 = vpop.f32.mrf.mxu3  ;;  %v3424_v40 = vld [vmem:[%s3492_s6] ss:$0 sm:$0xff] }
 0x21d   : > { %v1781_v49 = vadd.f32 %v1773_v48, %v1757_v47  ;;  %v2061_v62 = vpop.f32.mrf.mxu0 }
 0x21e   : > { %2092 = vst.msk [vmem:[#allocation4] sm:$0xff] %vm279_vm0, %v2084_v46  ;;  %v1874_v50 = vld [vmem:[#allocation4 + $0x18] sm:$0xff] }
 0x21f   : > { %v1882_v52 = vadd.f32 %v1874_v50, %v1856_v41  ;;  %1789 = vst.msk [vmem:[#allocation4 + $0x20] sm:$0xff] %vm279_vm0, %v1781_v49  ;;  %v2202_v49 = vld [vmem:[%s2657_s20] sm:$0xff] }
 0x220   : > { %v1976_v58 = vld [vmem:[#allocation4 + $0x10] sm:$0xff] }
 0x221   : > { %v1984_v61 = vadd.f32 %v1976_v58, %v1956_v35  ;;  %1890 = vst.msk [vmem:[#allocation4 + $0x18] sm:$0xff] %vm279_vm0, %v1882_v52 }
 0x222   : > { %v2077_v27 = vld [vmem:[#allocation4 + $0x8] sm:$0xff] }
 0x223   : > { %v1859_v28 = vpop.f32.mrf.mxu2  ;;  %v2085_v42 = vadd.f32 %v2077_v27, %v2055_v34  ;;  %1992 = vst.msk [vmem:[#allocation4 + $0x10] sm:$0xff] %vm279_vm0, %v1984_v61 }
 0x224   : > { %v1760_v43 = vpop.f32.mrf.mxu1  ;;  %v1962_v63 = vpop.f32.mrf.mxu3 }
 0x225   : > { %2093 = vst.msk [vmem:[#allocation4 + $0x8] sm:$0xff] %vm279_vm0, %v2085_v42  ;;  %v1782_v55 = vadd.f32 %v1774_v54, %v1760_v43  ;;  %v2064_v11 = vpop.f32.mrf.mxu0  ;;  %v2178_v24 = vld [vmem:[#allocation4] sm:$0xff] }
 0x226   : > { %v1875_v56 = vld [vmem:[#allocation4 + $0x20] sm:$0xff] }
 0x227   : > { %v1883_v57 = vadd.f32 %v1875_v56, %v1859_v28  ;;  %1790 = vst.msk [vmem:[#allocation4 + $0x28] sm:$0xff] %vm279_vm0, %v1782_v55  ;;  %v2203_v56 = vld [vmem:[%s2657_s20 + $0x8] sm:$0xff] }
 0x228   : > { %v1977_v59 = vld [vmem:[#allocation4 + $0x18] sm:$0xff] }
 0x229   : > { %v1985_v60 = vadd.f32 %v1977_v59, %v1959_v53  ;;  %1891 = vst.msk [vmem:[#allocation4 + $0x20] sm:$0xff] %vm279_vm0, %v1883_v57 }
 0x22a   : > { %v2078_v0 = vld [vmem:[#allocation4 + $0x10] sm:$0xff] }
 0x22b   : > { %v1862_v1 = vpop.f32.mrf.mxu2  ;;  %v2086_v3 = vadd.f32 %v2078_v0, %v2058_v51  ;;  %1993 = vst.msk [vmem:[#allocation4 + $0x18] sm:$0xff] %vm279_vm0, %v1985_v60 }
 0x22c   : > { %v1763_v4 = vpop.f32.mrf.mxu1  ;;  %v1965_v12 = vpop.f32.mrf.mxu3  ;;  %v2179_v39 = vld [vmem:[#allocation4 + $0x8] sm:$0xff] }
 0x22d   : > { %2094 = vst.msk [vmem:[#allocation4 + $0x10] sm:$0xff] %vm279_vm0, %v2086_v3  ;;  %v1783_v6 = vadd.f32 %v1775_v5, %v1763_v4  ;;  %v2067_v25 = vpop.f32.mrf.mxu0 }
 0x22e   : > { %v1876_v7 = vld [vmem:[#allocation4 + $0x28] sm:$0xff] }
 0x22f   : > { %v1884_v8 = vadd.f32 %v1876_v7, %v1862_v1  ;;  %1791 = vst.msk [vmem:[#allocation4 + $0x30] sm:$0xff] %vm279_vm0, %v1783_v6  ;;  %v2204_v7 = vld [vmem:[%s2657_s20 + $0x10] sm:$0xff] }
 0x230   : > { %v1978_v9 = vld [vmem:[#allocation4 + $0x20] sm:$0xff] }
 0x231   : > { %v1986_v44 = vadd.f32 %v1978_v9, %v1962_v63  ;;  %1892 = vst.msk [vmem:[#allocation4 + $0x28] sm:$0xff] %vm279_vm0, %v1884_v8 }
 0x232   : > { %v2079_v10 = vld [vmem:[#allocation4 + $0x18] sm:$0xff] }
 0x233   : > { %v2087_v13 = vadd.f32 %v2079_v10, %v2061_v62  ;;  %1994 = vst.msk [vmem:[#allocation4 + $0x20] sm:$0xff] %vm279_vm0, %v1986_v44  ;;  %v1865_v2 = vpop.f32.mrf.mxu2 }
 0x234   : > { %v1766_v14 = vpop.f32.mrf.mxu1  ;;  %v1968_v29 = vpop.f32.mrf.mxu3  ;;  %v2180_v28 = vld [vmem:[#allocation4 + $0x10] sm:$0xff] }
 0x235   : > { %2095 = vst.msk [vmem:[#allocation4 + $0x18] sm:$0xff] %vm279_vm0, %v2087_v13  ;;  %v1784_v16 = vadd.f32 %v1776_v15, %v1766_v14  ;;  %v2070_v48 = vpop.f32.mrf.mxu0  ;;  %v2205_v14 = vld [vmem:[%s2657_s20 + $0x18] sm:$0xff] }
 0x236   : > { %v1877_v17 = vld [vmem:[#allocation4 + $0x30] sm:$0xff] }
 0x237   : > { %v1885_v18 = vadd.f32 %v1877_v17, %v1865_v2  ;;  %1792 = vst.msk [vmem:[#allocation4 + $0x38] sm:$0xff] %vm279_vm0, %v1784_v16 }
 0x238   : > { %v1979_v19 = vld [vmem:[#allocation4 + $0x28] sm:$0xff] }
 0x239   : > { %v1987_v20 = vadd.f32 %v1979_v19, %v1965_v12  ;;  %1893 = vst.msk [vmem:[#allocation4 + $0x30] sm:$0xff] %vm279_vm0, %v1885_v18 }
 0x23a   : > { %v2080_v21 = vld [vmem:[#allocation4 + $0x20] sm:$0xff] }
 0x23b   : > { %v2088_v22 = vadd.f32 %v2080_v21, %v2064_v11  ;;  %1995 = vst.msk [vmem:[#allocation4 + $0x28] sm:$0xff] %vm279_vm0, %v1987_v20  ;;  %v1868_v30 = vpop.f32.mrf.mxu2 }
 0x23c   : > { %v2154_v23 = vpop.f32.mrf.mxu1  ;;  %v1971_v46 = vpop.f32.mrf.mxu3  ;;  %v2181_v1 = vld [vmem:[#allocation4 + $0x18] sm:$0xff] }
 0x23d   : > { %2096 = vst.msk [vmem:[#allocation4 + $0x20] sm:$0xff] %vm279_vm0, %v2088_v22  ;;  %v2186_v26 = vadd.f32 %v2178_v24, %v2154_v23  ;;  %v2073_v57 = vpop.f32.mrf.mxu0  ;;  %v2206_v23 = vld [vmem:[%s2657_s20 + $0x20] sm:$0xff] }
 0x23e   : > { %v1878_v31 = vld [vmem:[#allocation4 + $0x38] sm:$0xff] }
 0x23f   : > { %v1886_v32 = vadd.f32 %v1878_v31, %v1868_v30  ;;  %2194 = vst.msk [vmem:[#allocation4] sm:$0xff] %vm279_vm0, %v2186_v26 }
 0x240   : > { %v1980_v33 = vld [vmem:[#allocation4 + $0x30] sm:$0xff] }
 0x241   : > { %v1988_v34 = vadd.f32 %v1980_v33, %v1968_v29  ;;  %1894 = vst.msk [vmem:[#allocation4 + $0x38] sm:$0xff] %vm279_vm0, %v1886_v32 }
 0x242   : > { %v2081_v35 = vld [vmem:[#allocation4 + $0x28] sm:$0xff] }
 0x243   : > { %v2089_v36 = vadd.f32 %v2081_v35, %v2067_v25  ;;  %1996 = vst.msk [vmem:[#allocation4 + $0x30] sm:$0xff] %vm279_vm0, %v1988_v34  ;;  %v2207_v34 = vld [vmem:[%s2657_s20 + $0x28] sm:$0xff] }
 0x244   : > { %v2157_v38 = vpop.f32.mrf.mxu1  ;;  %v2182_v10 = vld [vmem:[#allocation4 + $0x20] sm:$0xff] }
 0x245   : > { %2097 = vst.msk [vmem:[#allocation4 + $0x28] sm:$0xff] %vm279_vm0, %v2089_v36  ;;  %v2187_v41 = vadd.f32 %v2179_v39, %v2157_v38 }
 0x246   : > { %v2210_v45 = vld [vmem:[#allocation4] sm:$0xff] }
 0x247   : > { %v2222_v47 = vmul.f32 %v3418_v37, %v2210_v45  ;;  %2195 = vst.msk [vmem:[#allocation4 + $0x8] sm:$0xff] %vm279_vm0, %v2187_v41 }
 0x248   : > { %v1981_v50 = vld [vmem:[#allocation4 + $0x38] sm:$0xff] }
 0x249   : > { %v2234_v51 = vadd.f32 %v3424_v40, %v2222_v47  ;;  %v1989_v52 = vadd.f32 %v1981_v50, %v1971_v46 }
 0x24a   : > { %v2082_v53 = vld [vmem:[#allocation4 + $0x30] sm:$0xff] }
 0x24b   : > { %v2090_v58 = vadd.f32 %v2082_v53, %v2070_v48  ;;  %v2242_v61 = vadd.f32 %v2234_v51, %v2202_v49  ;;  %1997 = vst.msk [vmem:[#allocation4 + $0x38] sm:$0xff] %vm279_vm0, %v1989_v52  ;;  %v2208_v48 = vld [vmem:[%s2657_s20 + $0x30] sm:$0xff] }
 0x24c   : > { %v2160_v27 = vpop.f32.mrf.mxu1  ;;  %v2183_v18 = vld [vmem:[#allocation4 + $0x28] sm:$0xff] }
 0x24d   : > { %2098 = vst.msk [vmem:[#allocation4 + $0x30] sm:$0xff] %vm279_vm0, %v2090_v58  ;;  %v2250_v42 = vmax.f32 %v2242_v61, 0.0  ;;  %v2188_v43 = vadd.f32 %v2180_v28, %v2160_v27  ;;  %v2209_v58 = vld [vmem:[%s2657_s20 + $0x38] sm:$0xff] }
 0x24e   : > { %v2211_v54 = vld [vmem:[#allocation4 + $0x8] sm:$0xff] }
 0x24f   : > { %2258 = vst.msk [vmem:[%s3436_s30] sm:$0xff] %vm279_vm0, %v2250_v42  ;;  %v2223_v55 = vmul.f32 %v3418_v37, %v2211_v54 }
 0x250   : > { %2196 = vst.msk [vmem:[#allocation4 + $0x10] sm:$0xff] %vm279_vm0, %v2188_v43 }
 0x251   : > { %v2235_v59 = vadd.f32 %v3424_v40, %v2223_v55 }
 0x252   : > { %v2083_v60 = vld [vmem:[#allocation4 + $0x38] sm:$0xff] }
 0x253   : > { %v2243_v62 = vadd.f32 %v2235_v59, %v2203_v56  ;;  %v2091_v63 = vadd.f32 %v2083_v60, %v2073_v57 }
 0x254   : > { %v2163_v0 = vpop.f32.mrf.mxu1  ;;  %v2184_v29 = vld [vmem:[#allocation4 + $0x30] sm:$0xff] }
 0x255   : > { %v2251_v3 = vmax.f32 %v2243_v62, 0.0  ;;  %2099 = vst.msk [vmem:[#allocation4 + $0x38] sm:$0xff] %vm279_vm0, %v2091_v63  ;;  %v2189_v4 = vadd.f32 %v2181_v1, %v2163_v0 }
 0x257   : > { %2259 = vst.msk [vmem:[%s3436_s30 + $0x8] sm:$0xff] %vm279_vm0, %v2251_v3  ;;  %v2212_v5 = vld [vmem:[#allocation4 + $0x10] sm:$0xff] }
 0x258   : > { %v2224_v6 = vmul.f32 %v3418_v37, %v2212_v5  ;;  %2197 = vst.msk [vmem:[#allocation4 + $0x18] sm:$0xff] %vm279_vm0, %v2189_v4 }
 0x25a   : > { %v2236_v8 = vadd.f32 %v3424_v40, %v2224_v6 }
 0x25c   : > { %v2244_v9 = vadd.f32 %v2236_v8, %v2204_v7  ;;  %v2166_v44 = vpop.f32.mrf.mxu1  ;;  %v2185_v39 = vld [vmem:[#allocation4 + $0x38] sm:$0xff] }
 0x25d   : > { %v2190_v13 = vadd.f32 %v2182_v10, %v2166_v44 }
 0x25e   : > { %v2252_v11 = vmax.f32 %v2244_v9, 0.0 }
 0x25f   : > { %v2213_v12 = vld [vmem:[#allocation4 + $0x18] sm:$0xff]  ;;  %2198 = vst.msk [vmem:[#allocation4 + $0x20] sm:$0xff] %vm279_vm0, %v2190_v13 }
 0x260   : > { %2260 = vst.msk [vmem:[%s3436_s30 + $0x10] sm:$0xff] %vm279_vm0, %v2252_v11  ;;  %v2225_v2 = vmul.f32 %v3418_v37, %v2213_v12 }
 0x262   : > { %v2237_v15 = vadd.f32 %v3424_v40, %v2225_v2 }
 0x264   : > { %v2245_v16 = vadd.f32 %v2237_v15, %v2205_v14  ;;  %v2169_v17 = vpop.f32.mrf.mxu1 }
 0x265   : > { %v2191_v19 = vadd.f32 %v2183_v18, %v2169_v17 }
 0x266   : > { %v2253_v20 = vmax.f32 %v2245_v16, 0.0  ;;  %v2214_v21 = vld [vmem:[#allocation4 + $0x20] sm:$0xff] }
 0x267   : > { %v2226_v22 = vmul.f32 %v3418_v37, %v2214_v21  ;;  %2199 = vst.msk [vmem:[#allocation4 + $0x28] sm:$0xff] %vm279_vm0, %v2191_v19 }
 0x268   : > { %2261 = vst.msk [vmem:[%s3436_s30 + $0x18] sm:$0xff] %vm279_vm0, %v2253_v20 }
 0x269   : > { %v2238_v24 = vadd.f32 %v3424_v40, %v2226_v22 }
 0x26b   : > { %v2246_v25 = vadd.f32 %v2238_v24, %v2206_v23 }
 0x26c   : > { %v2172_v26 = vpop.f32.mrf.mxu1 }
 0x26d   : > { %v2254_v30 = vmax.f32 %v2246_v25, 0.0  ;;  %v2192_v31 = vadd.f32 %v2184_v29, %v2172_v26 }
 0x26e   : > { %v2215_v32 = vld [vmem:[#allocation4 + $0x28] sm:$0xff] }
 0x26f   : > { %2262 = vst.msk [vmem:[%s3436_s30 + $0x20] sm:$0xff] %vm279_vm0, %v2254_v30  ;;  %v2227_v33 = vmul.f32 %v3418_v37, %v2215_v32 }
 0x270   : > { %2200 = vst.msk [vmem:[#allocation4 + $0x30] sm:$0xff] %vm279_vm0, %v2192_v31 }
 0x271   : > { %v2239_v35 = vadd.f32 %v3424_v40, %v2227_v33 }
 0x273   : > { %v2247_v36 = vadd.f32 %v2239_v35, %v2207_v34 }
 0x274   : > { %v2175_v38 = vpop.f32.mrf.mxu1 }
 0x275   : > { %v2255_v41 = vmax.f32 %v2247_v36, 0.0  ;;  %v2193_v45 = vadd.f32 %v2185_v39, %v2175_v38 }
 0x277   : > { %2263 = vst.msk [vmem:[%s3436_s30 + $0x28] sm:$0xff] %vm279_vm0, %v2255_v41  ;;  %v2216_v46 = vld [vmem:[#allocation4 + $0x30] sm:$0xff] }
 0x278   : > { %v2228_v47 = vmul.f32 %v3418_v37, %v2216_v46  ;;  %2201 = vst.msk [vmem:[#allocation4 + $0x38] sm:$0xff] %vm279_vm0, %v2193_v45 }
 0x27a   : > { %v2240_v49 = vadd.f32 %v3424_v40, %v2228_v47 }
 0x27c   : > { %v2248_v50 = vadd.f32 %v2240_v49, %v2208_v48 }
 0x27e   : > { %v2256_v51 = vmax.f32 %v2248_v50, 0.0 }
 0x27f   : > { %v2217_v52 = vld [vmem:[#allocation4 + $0x38] sm:$0xff] }
 0x280   : > { %2264 = vst.msk [vmem:[%s3436_s30 + $0x30] sm:$0xff] %vm279_vm0, %v2256_v51  ;;  %v2229_v53 = vmul.f32 %v3418_v37, %v2217_v52 }
 0x282   : > { %v2241_v61 = vadd.f32 %v3424_v40, %v2229_v53 }
 0x284   : > { %v2249_v27 = vadd.f32 %v2241_v61, %v2209_v58 }
 0x286   : > { %v2257_v28 = vmax.f32 %v2249_v27, 0.0 }
 0x288   : > { %2265 = vst.msk [vmem:[%s3436_s30 + $0x38] sm:$0xff] %vm279_vm0, %v2257_v28 }
 0x289 PF: > { %s17_s24 = sadd.s32 1, %s2569_s24  }
 0x28a   : > { %p14_p4 = scmp.ge.s32.totalorder %s17_s24, 4  }
 0x28c   :  { %16 = sbr.rel (!%p14_p4) target bundleno = 1 (0x1), region = 100 }

</bundles_post_ra>
